<compile_context>
chip_gen: v5e
topology: v5e:2x2
jax: 0.10.0
libtpu: 0.0.40
codegen_flags: <defaults>
</compile_context>

<pallas_src>
import jax
import jax.numpy as jnp
import numpy as np
from jax.experimental import pallas as pl
from jax.experimental.pallas import tpu as pltpu

# ----- small config consistent with ClipCaptionModel.__init__ -----
BATCH = 2
CLIP_HIDDEN = 32          # clip_hidden_size      (512 in the original)
CLIP_PROJ_LEN = 4         # clip_project_length   (10 in the original)
PREFIX_LEN = 4            # continuous_length     (10 in the original)
D_MODEL = 32              # gpt_hidden_size       (768 for gpt2)
NUM_LAYERS = 2            # num_layers            (8 in the original)
NUM_HEADS = 4             # num_heads             (8 in the original)
HEAD_SIZE = D_MODEL // NUM_HEADS
MLP_HIDDEN = int(D_MODEL * 2.0)   # Transformer default mlp_ratio = 2.0
SEQ = CLIP_PROJ_LEN + PREFIX_LEN
VOCAB = 64                # synthetic wte vocab
CAP_LEN = 8               # max_length_per_caption
LN_EPS = 1e-5

# Batch block handled per grid step on the "parallel" axis.  Toy: one sample
# per block.  At the real config use larger blocks so the per-layer weight DMA
# amortises over more compute per step.
BATCH_BLOCK = 1
assert BATCH % BATCH_BLOCK == 0
NUM_BATCH_BLOCKS = BATCH // BATCH_BLOCK

# MXU operand dtype.  jnp.bfloat16 recommended on v6e/v7x (2x MXU rate and
# half the per-layer weight DMA / VMEM).  Kept f32 here so the toy config
# verifies tightly against the f32 reference.
MXU_DTYPE = jnp.float32


# --------------------------- Pallas kernel ---------------------------------
def _layernorm(v, g, b):
    mu = jnp.mean(v, axis=-1, keepdims=True)
    var = jnp.mean(jnp.square(v - mu), axis=-1, keepdims=True)
    return (v - mu) * jax.lax.rsqrt(var + LN_EPS) * g + b


def mapping_network_kernel(clip_ref, wlin_ref, blin_ref, prefix_ref,
                           ln1g_ref, ln1b_ref, wqkv_ref, wproj_ref, bproj_ref,
                           ln2g_ref, ln2b_ref, w1_ref, b1_ref, w2_ref, b2_ref,
                           out_ref, x_ref):
    """One grid step = (batch block, layer).  x_ref is the resident activation
    accumulator; per-layer weight blocks are streamed in by BlockSpec."""
    layer = pl.program_id(1)
    n_rows = BATCH_BLOCK * SEQ

    # ---- first layer step for this batch block: build x = [clip proj | prefix]
    @pl.when(layer == 0)
    def _():
        clip = clip_ref[...].reshape(BATCH_BLOCK, CLIP_HIDDEN)
        proj = (jnp.dot(clip.astype(wlin_ref.dtype), wlin_ref[...],
                        preferred_element_type=jnp.float32)
                + blin_ref[...])                                   # (BB, P*D)
        # two bulk ops: one relayout of the fused projection + one broadcast
        x_ref[...] = jnp.concatenate(
            [proj.reshape(BATCH_BLOCK, CLIP_PROJ_LEN, D_MODEL),
             jnp.broadcast_to(prefix_ref[...][None],
                              (BATCH_BLOCK, PREFIX_LEN, D_MODEL))],
            axis=1)

    x = x_ref[...]                                                 # (BB, S, D) f32

    # ---------------- self-attention (pre-LN; q/kv bias=False) --------------
    y = _layernorm(x, ln1g_ref[...], ln1b_ref[...])
    qkv = jnp.dot(y.reshape(n_rows, D_MODEL).astype(wqkv_ref.dtype),
                  wqkv_ref[0],
                  preferred_element_type=jnp.float32)              # (N, 3D)
    qkv = qkv.reshape(BATCH_BLOCK, SEQ, 3 * D_MODEL)

    scale = HEAD_SIZE ** -0.5
    head_outs = []
    for h in range(NUM_HEADS):
        q = qkv[:, :, h * HEAD_SIZE:(h + 1) * HEAD_SIZE]
        k = qkv[:, :, D_MODEL + h * HEAD_SIZE:D_MODEL + (h + 1) * HEAD_SIZE]
        v = qkv[:, :, 2 * D_MODEL + h * HEAD_SIZE:
                2 * D_MODEL + (h + 1) * HEAD_SIZE]
        s = jnp.einsum('bnd,bmd->bnm', q, k,
                       preferred_element_type=jnp.float32) * scale  # (BB,S,S)
        m = jnp.max(s, axis=-1, keepdims=True)
        e = jnp.exp(s - m)
        # approx reciprocal (EUP): ~1e-3 rel error; fine for inference and
        # covered by the test tolerance.
        a = e * pl.reciprocal(jnp.sum(e, axis=-1, keepdims=True), approx=True)
        head_outs.append(jnp.einsum('bnm,bmd->bnd', a, v,
                                    preferred_element_type=jnp.float32))
    # concat heads back onto the lane axis -> single dense output projection
    o = jnp.concatenate(head_outs, axis=-1).reshape(n_rows, D_MODEL)
    attn = (jnp.dot(o.astype(wproj_ref.dtype), wproj_ref[0],
                    preferred_element_type=jnp.float32) + bproj_ref[0])
    x = x + attn.reshape(BATCH_BLOCK, SEQ, D_MODEL)

    # -------------------- MLP (pre-LN, ReLU, dropout p=0) -------------------
    y2 = _layernorm(x, ln2g_ref[...], ln2b_ref[...])
    h1 = jnp.maximum(
        jnp.dot(y2.reshape(n_rows, D_MODEL).astype(w1_ref.dtype), w1_ref[0],
                preferred_element_type=jnp.float32) + b1_ref[0], 0.0)
    mlp = (jnp.dot(h1.astype(w2_ref.dtype), w2_ref[0],
                   preferred_element_type=jnp.float32) + b2_ref[0])
    x = x + mlp.reshape(BATCH_BLOCK, SEQ, D_MODEL)

    x_ref[...] = x

    # full (BB, SEQ, D) store; the non-8-aligned prefix-row slice is done in
    # the wrapper.  Writeback only happens when the batch-block index changes.
    @pl.when(layer == NUM_LAYERS - 1)
    def _():
        out_ref[...] = x.astype(out_ref.dtype)


# ----------------------------- wrapper --------------------------------------
def prepare_mapping_params(params):
    """One-time weight re-layout for the kernel.  Call at init (outside jit),
    not per forward call."""
    L, D = NUM_LAYERS, D_MODEL
    # fused CLIP projection weight: (clip_hidden, P*D) -> one lane-dense dot
    w_lin = jnp.transpose(params['w_lin'], (1, 0, 2)).reshape(
        CLIP_HIDDEN, CLIP_PROJ_LEN * D).astype(MXU_DTYPE)
    b_lin = params['b_lin'].reshape(1, CLIP_PROJ_LEN * D)
    # fused QKV weight: columns = [q | k | v], each head-major, matching the
    # PyTorch to_queries / to_keys_values reshape order.
    w_qkv = jnp.concatenate([params['w_q'], params['w_kv']],
                            axis=-1).astype(MXU_DTYPE)              # (L, D, 3D)
    return (w_lin, b_lin, params['prefix'],
            params['ln1_g'].reshape(L, 1, D), params['ln1_b'].reshape(L, 1, D),
            w_qkv,
            params['w_proj'].astype(MXU_DTYPE),
            params['b_proj'].reshape(L, 1, D),
            params['ln2_g'].reshape(L, 1, D), params['ln2_b'].reshape(L, 1, D),
            params['w_fc1'].astype(MXU_DTYPE),
            params['b_fc1'].reshape(L, 1, MLP_HIDDEN),
            params['w_fc2'].astype(MXU_DTYPE),
            params['b_fc2'].reshape(L, 1, D))


@jax.jit
def mapping_network(clip_feat, prepped):
    """clip_feat: (BATCH, CLIP_HIDDEN) -> (BATCH, PREFIX_LEN, D_MODEL)."""
    (w_lin, b_lin, prefix, ln1_g, ln1_b, w_qkv, w_proj, b_proj,
     ln2_g, ln2_b, w_fc1, b_fc1, w_fc2, b_fc2) = prepped
    clip3 = clip_feat.reshape(BATCH, 1, CLIP_HIDDEN)

    def per_layer(d1, d2):          # layer-streamed weight block
        return pl.BlockSpec((1, d1, d2), lambda b, l: (l, 0, 0))

    def replicated(d1, d2):         # small, fetched once, reused
        return pl.BlockSpec((d1, d2), lambda b, l: (0, 0))

    x = pl.pallas_call(
        mapping_network_kernel,
        out_shape=jax.ShapeDtypeStruct((BATCH, SEQ, D_MODEL), jnp.float32),
        grid=(NUM_BATCH_BLOCKS, NUM_LAYERS),
        in_specs=[
            pl.BlockSpec((BATCH_BLOCK, 1, CLIP_HIDDEN), lambda b, l: (b, 0, 0)),
            replicated(CLIP_HIDDEN, CLIP_PROJ_LEN * D_MODEL),   # w_lin
            replicated(1, CLIP_PROJ_LEN * D_MODEL),             # b_lin
            replicated(PREFIX_LEN, D_MODEL),                    # prefix
            per_layer(1, D_MODEL),                              # ln1_g
            per_layer(1, D_MODEL),                              # ln1_b
            per_layer(D_MODEL, 3 * D_MODEL),                    # w_qkv
            per_layer(D_MODEL, D_MODEL),                        # w_proj
            per_layer(1, D_MODEL),                              # b_proj
            per_layer(1, D_MODEL),                              # ln2_g
            per_layer(1, D_MODEL),                              # ln2_b
            per_layer(D_MODEL, MLP_HIDDEN),                     # w_fc1
            per_layer(1, MLP_HIDDEN),                           # b_fc1
            per_layer(MLP_HIDDEN, D_MODEL),                     # w_fc2
            per_layer(1, D_MODEL),                              # b_fc2
        ],
        out_specs=pl.BlockSpec((BATCH_BLOCK, SEQ, D_MODEL),
                               lambda b, l: (b, 0, 0)),
        scratch_shapes=[pltpu.VMEM((BATCH_BLOCK, SEQ, D_MODEL), jnp.float32)],
        compiler_params=pltpu.CompilerParams(
            dimension_semantics=("parallel", "arbitrary"),
            # explicit scoped-VMEM budget; retune (and prefer bf16 weights)
            # for the real D=768/L=8 config, especially on v7x (64 MiB VMEM).
            vmem_limit_bytes=32 * 1024 * 1024),
    )(clip3, w_lin, b_lin, prefix, ln1_g, ln1_b, w_qkv, w_proj, b_proj,
      ln2_g, ln2_b, w_fc1, b_fc1, w_fc2, b_fc2)
    return x[:, CLIP_PROJ_LEN:, :]


# ----------------------- pure-JAX reference (for checking) -----------------
def mapping_network_ref(clip_feat, params):
    b = clip_feat.shape[0]
    proj = jnp.einsum('bc,pcd->bpd', clip_feat, params['w_lin']) + params['b_lin'][None]
    prefix = jnp.broadcast_to(params['prefix'][None], (b, PREFIX_LEN, D_MODEL))
    x = jnp.concatenate([proj, prefix], axis=1)
    scale = HEAD_SIZE ** -0.5

    def ln(v, g, bb):
        mu = v.mean(-1, keepdims=True)
        var = ((v - mu) ** 2).mean(-1, keepdims=True)
        return (v - mu) / jnp.sqrt(var + LN_EPS) * g + bb

    for l in range(NUM_LAYERS):
        y = ln(x, params['ln1_g'][l], params['ln1_b'][l])
        q = y @ params['w_q'][l]
        kv = y @ params['w_kv'][l]
        k, v = kv[..., :D_MODEL], kv[..., D_MODEL:]
        qh = q.reshape(b, SEQ, NUM_HEADS, HEAD_SIZE)
        kh = k.reshape(b, SEQ, NUM_HEADS, HEAD_SIZE)
        vh = v.reshape(b, SEQ, NUM_HEADS, HEAD_SIZE)
        att = jnp.einsum('bnhd,bmhd->bnmh', qh, kh) * scale
        att = jax.nn.softmax(att, axis=2)
        o = jnp.einsum('bnmh,bmhd->bnhd', att, vh).reshape(b, SEQ, D_MODEL)
        x = x + (o @ params['w_proj'][l] + params['b_proj'][l])
        y2 = ln(x, params['ln2_g'][l], params['ln2_b'][l])
        h1 = jax.nn.relu(y2 @ params['w_fc1'][l] + params['b_fc1'][l])
        x = x + (h1 @ params['w_fc2'][l] + params['b_fc2'][l])
    return x[:, CLIP_PROJ_LEN:, :]


# -------------------- ClipCaptionModel.forward (glue) ----------------------
def clip_caption_forward(continuous_prompt, caption_tokens, params, prepped,
                         hard_prompts_length=None, mask=None,
                         soft_prompt_first=False, only_hard_prompt=False):
    # word_embed: wte lookup (glue)
    caption_emb = jnp.take(params['wte'], caption_tokens, axis=0)      # (b, Lc, D)
    # mapping_network (Pallas kernel)
    cont_emb = mapping_network(continuous_prompt, prepped)             # (b, T, D)

    if hard_prompts_length is not None:
        if only_hard_prompt:
            embeddings = caption_emb
        elif soft_prompt_first:
            embeddings = jnp.concatenate([cont_emb, caption_emb], axis=1)
        else:
            rows = []
            for i, length in enumerate(hard_prompts_length):
                rows.append(jnp.concatenate(
                    [caption_emb[i, :length], cont_emb[i], caption_emb[i, length:]],
                    axis=0)[None])
            embeddings = jnp.concatenate(rows, axis=0)
    else:
        embeddings = jnp.concatenate([cont_emb, caption_emb], axis=1)

    dummy = jnp.zeros((caption_tokens.shape[0], PREFIX_LEN),
                      dtype=caption_tokens.dtype)   # int32 (x64 disabled in JAX)
    labels = jnp.concatenate([dummy, caption_tokens], axis=1)
    # TODO(synk): pretrained GPT2LMHeadModel/OPT forward (HF checkpoint, uses
    # `mask`) has no in-script Pallas equivalent; return its inputs instead.
    return embeddings, labels


# ------------------------------ params --------------------------------------
def init_params(key):
    ks = jax.random.split(key, 12)
    s = 0.02
    return dict(
        w_lin=jax.random.normal(ks[0], (CLIP_PROJ_LEN, CLIP_HIDDEN, D_MODEL), jnp.float32) * s,
        b_lin=jax.random.normal(ks[1], (CLIP_PROJ_LEN, D_MODEL), jnp.float32) * s,
        prefix=jax.random.normal(ks[2], (PREFIX_LEN, D_MODEL), jnp.float32),
        ln1_g=jnp.ones((NUM_LAYERS, D_MODEL), jnp.float32),
        ln1_b=jnp.zeros((NUM_LAYERS, D_MODEL), jnp.float32),
        w_q=jax.random.normal(ks[3], (NUM_LAYERS, D_MODEL, D_MODEL), jnp.float32) * s,
        w_kv=jax.random.normal(ks[4], (NUM_LAYERS, D_MODEL, 2 * D_MODEL), jnp.float32) * s,
        w_proj=jax.random.normal(ks[5], (NUM_LAYERS, D_MODEL, D_MODEL), jnp.float32) * s,
        b_proj=jax.random.normal(ks[6], (NUM_LAYERS, D_MODEL), jnp.float32) * s,
        ln2_g=jnp.ones((NUM_LAYERS, D_MODEL), jnp.float32),
        ln2_b=jnp.zeros((NUM_LAYERS, D_MODEL), jnp.float32),
        w_fc1=jax.random.normal(ks[7], (NUM_LAYERS, D_MODEL, MLP_HIDDEN), jnp.float32) * s,
        b_fc1=jax.random.normal(ks[8], (NUM_LAYERS, MLP_HIDDEN), jnp.float32) * s,
        w_fc2=jax.random.normal(ks[9], (NUM_LAYERS, MLP_HIDDEN, D_MODEL), jnp.float32) * s,
        b_fc2=jax.random.normal(ks[10], (NUM_LAYERS, D_MODEL), jnp.float32) * s,
        wte=jax.random.normal(ks[11], (VOCAB, D_MODEL), jnp.float32) * s,
    )


if __name__ == "__main__":
    key = jax.random.PRNGKey(0)
    kp, kx, kt = jax.random.split(key, 3)
    params = init_params(kp)
    # one-time kernel-layout prep (hoisted out of the per-call jitted path)
    prepped = prepare_mapping_params(params)

    continuous_prompt = jax.random.normal(kx, (BATCH, CLIP_HIDDEN), jnp.float32)
    caption_tokens = jax.random.randint(kt, (BATCH, CAP_LEN), 0, VOCAB, dtype=jnp.int32)

    embeddings, labels = clip_caption_forward(continuous_prompt, caption_tokens,
                                              params, prepped)
    jax.block_until_ready(embeddings)

    # verify the Pallas mapping-network kernel against the pure-JAX reference
    cont_pallas = mapping_network(continuous_prompt, prepped)
    cont_ref = mapping_network_ref(continuous_prompt, params)
    np.testing.assert_allclose(np.asarray(cont_pallas), np.asarray(cont_ref),
                               rtol=2e-2, atol=2e-2)

    assert embeddings.shape == (BATCH, PREFIX_LEN + CAP_LEN, D_MODEL)
    assert labels.shape == (BATCH, PREFIX_LEN + CAP_LEN)
    print("KERNEL_OK")
</pallas_src>

<mosaic_0001>
module attributes {stable_mosaic.version = 11 : i64} {
  func.func @mapping_network_kernel(%arg0: i32, %arg1: i32, %arg2: memref<1x1x32xf32, #tpu.memory_space<vmem>>, %arg3: memref<32x128xf32, #tpu.memory_space<vmem>>, %arg4: memref<1x128xf32, #tpu.memory_space<vmem>>, %arg5: memref<4x32xf32, #tpu.memory_space<vmem>>, %arg6: memref<1x1x32xf32, #tpu.memory_space<vmem>>, %arg7: memref<1x1x32xf32, #tpu.memory_space<vmem>>, %arg8: memref<1x32x96xf32, #tpu.memory_space<vmem>>, %arg9: memref<1x32x32xf32, #tpu.memory_space<vmem>>, %arg10: memref<1x1x32xf32, #tpu.memory_space<vmem>>, %arg11: memref<1x1x32xf32, #tpu.memory_space<vmem>>, %arg12: memref<1x1x32xf32, #tpu.memory_space<vmem>>, %arg13: memref<1x32x64xf32, #tpu.memory_space<vmem>>, %arg14: memref<1x1x64xf32, #tpu.memory_space<vmem>>, %arg15: memref<1x64x32xf32, #tpu.memory_space<vmem>>, %arg16: memref<1x1x32xf32, #tpu.memory_space<vmem>>, %arg17: memref<1x8x32xf32, #tpu.memory_space<vmem>>, %arg18: memref<1x8x32xf32, #tpu.memory_space<vmem>>) attributes {dimension_semantics = [#tpu.dimension_semantics<parallel>, #tpu.dimension_semantics<arbitrary>], iteration_bounds = array<i64: 2, 2>, scalar_prefetch = 0 : i64, scratch_operands = 1 : i64, tpu.core_type = #tpu.core_type<tc>, window_params = [{transform_indices = @transform_0, window_bounds = array<i64: 1, 1, 32>}, {pipeline_mode = #tpu.pipeline_mode<synchronous>, transform_indices = @transform_1, window_bounds = array<i64: 32, 128>}, {pipeline_mode = #tpu.pipeline_mode<synchronous>, transform_indices = @transform_2, window_bounds = array<i64: 1, 128>}, {pipeline_mode = #tpu.pipeline_mode<synchronous>, transform_indices = @transform_3, window_bounds = array<i64: 4, 32>}, {transform_indices = @transform_4, window_bounds = array<i64: 1, 1, 32>}, {transform_indices = @transform_5, window_bounds = array<i64: 1, 1, 32>}, {transform_indices = @transform_6, window_bounds = array<i64: 1, 32, 96>}, {transform_indices = @transform_7, window_bounds = array<i64: 1, 32, 32>}, {transform_indices = @transform_8, window_bounds = array<i64: 1, 1, 32>}, {transform_indices = @transform_9, window_bounds = array<i64: 1, 1, 32>}, {transform_indices = @transform_10, window_bounds = array<i64: 1, 1, 32>}, {transform_indices = @transform_11, window_bounds = array<i64: 1, 32, 64>}, {transform_indices = @transform_12, window_bounds = array<i64: 1, 1, 64>}, {transform_indices = @transform_13, window_bounds = array<i64: 1, 64, 32>}, {transform_indices = @transform_14, window_bounds = array<i64: 1, 1, 32>}, {transform_indices = @transform_15, window_bounds = array<i64: 1, 8, 32>}]} {
    %c0_i32 = arith.constant 0 : i32
    %0 = arith.cmpi eq, %arg1, %c0_i32 : i32
    %1 = arith.extui %0 : i1 to i32
    %c0_i32_0 = arith.constant 0 : i32
    %2 = arith.cmpi ne, %1, %c0_i32_0 : i32
    scf.if %2 {
      %c0_74 = arith.constant 0 : index
      %c0_75 = arith.constant 0 : index
      %c0_76 = arith.constant 0 : index
      %159 = vector.load %arg2[%c0_74, %c0_75, %c0_76] : memref<1x1x32xf32, #tpu.memory_space<vmem>>, vector<1x1x32xf32>
      %160 = vector.shape_cast %159 : vector<1x1x32xf32> to vector<1x32xf32>
      %c0_77 = arith.constant 0 : index
      %c0_78 = arith.constant 0 : index
      %161 = vector.load %arg3[%c0_77, %c0_78] : memref<32x128xf32, #tpu.memory_space<vmem>>, vector<32x128xf32>
      %cst_79 = arith.constant dense<0.000000e+00> : vector<1x128xf32>
      %162 = tpu.matmul %160, %161, %cst_79 {dimension_numbers = #tpu.dot_dimension_numbers<[1], [0], [0], [1], [0, 0, 1, 1], [], []>} : vector<1x32xf32>, vector<32x128xf32>, vector<1x128xf32> -> vector<1x128xf32>
      %c0_80 = arith.constant 0 : index
      %c0_81 = arith.constant 0 : index
      %163 = vector.load %arg4[%c0_80, %c0_81] : memref<1x128xf32, #tpu.memory_space<vmem>>, vector<1x128xf32>
      %164 = arith.addf %162, %163 : vector<1x128xf32>
      %165 = vector.shape_cast %164 : vector<1x128xf32> to vector<1x4x32xf32>
      %c0_82 = arith.constant 0 : index
      %c0_83 = arith.constant 0 : index
      %166 = vector.load %arg5[%c0_82, %c0_83] : memref<4x32xf32, #tpu.memory_space<vmem>>, vector<4x32xf32>
      %167 = vector.shape_cast %166 : vector<4x32xf32> to vector<1x4x32xf32>
      %168 = tpu.concatenate %165, %167 in 1 : vector<1x4x32xf32>, vector<1x4x32xf32> -> vector<1x8x32xf32>
      %c0_84 = arith.constant 0 : index
      %c0_85 = arith.constant 0 : index
      %c0_86 = arith.constant 0 : index
      %169 = vector.load %arg18[%c0_84, %c0_85, %c0_86] : memref<1x8x32xf32, #tpu.memory_space<vmem>>, vector<1x8x32xf32>
      tpu.vector_store %arg18[%c0_84, %c0_85, %c0_86], %168 {strides = array<i32>} : memref<1x8x32xf32, #tpu.memory_space<vmem>>, vector<1x8x32xf32>,
    } else {
    }
    %c0 = arith.constant 0 : index
    %c0_1 = arith.constant 0 : index
    %c0_2 = arith.constant 0 : index
    %3 = vector.load %arg18[%c0, %c0_1, %c0_2] : memref<1x8x32xf32, #tpu.memory_space<vmem>>, vector<1x8x32xf32>
    %c0_3 = arith.constant 0 : index
    %c0_4 = arith.constant 0 : index
    %c0_5 = arith.constant 0 : index
    %4 = vector.load %arg6[%c0_3, %c0_4, %c0_5] : memref<1x1x32xf32, #tpu.memory_space<vmem>>, vector<1x1x32xf32>
    %c0_6 = arith.constant 0 : index
    %c0_7 = arith.constant 0 : index
    %c0_8 = arith.constant 0 : index
    %5 = vector.load %arg7[%c0_6, %c0_7, %c0_8] : memref<1x1x32xf32, #tpu.memory_space<vmem>>, vector<1x1x32xf32>
    %cst = arith.constant dense<0.000000e+00> : vector<1x8xf32>
    %6 = vector.multi_reduction <add>, %3, %cst [2] : vector<1x8x32xf32> to vector<1x8xf32>
    %7 = vector.shape_cast %6 : vector<1x8xf32> to vector<1x8x1xf32>
    %cst_9 = arith.constant 3.200000e+01 : f32
    %8 = vector.broadcast %cst_9 : f32 to vector<1x8x1xf32>
    %9 = arith.divf %7, %8 : vector<1x8x1xf32>
    %10 = vector.broadcast %9 : vector<1x8x1xf32> to vector<1x8x32xf32>
    %11 = arith.subf %3, %10 : vector<1x8x32xf32>
    %12 = arith.mulf %11, %11 : vector<1x8x32xf32>
    %cst_10 = arith.constant dense<0.000000e+00> : vector<1x8xf32>
    %13 = vector.multi_reduction <add>, %12, %cst_10 [2] : vector<1x8x32xf32> to vector<1x8xf32>
    %14 = vector.shape_cast %13 : vector<1x8xf32> to vector<1x8x1xf32>
    %cst_11 = arith.constant 3.200000e+01 : f32
    %15 = vector.broadcast %cst_11 : f32 to vector<1x8x1xf32>
    %16 = arith.divf %14, %15 : vector<1x8x1xf32>
    %17 = vector.broadcast %9 : vector<1x8x1xf32> to vector<1x8x32xf32>
    %18 = arith.subf %3, %17 : vector<1x8x32xf32>
    %cst_12 = arith.constant 9.99999974E-6 : f32
    %19 = vector.broadcast %cst_12 : f32 to vector<1x8x1xf32>
    %20 = arith.addf %16, %19 : vector<1x8x1xf32>
    %21 = math.rsqrt %20 : vector<1x8x1xf32>
    %22 = vector.broadcast %21 : vector<1x8x1xf32> to vector<1x8x32xf32>
    %23 = arith.mulf %18, %22 : vector<1x8x32xf32>
    %24 = vector.broadcast %4 : vector<1x1x32xf32> to vector<1x8x32xf32>
    %25 = arith.mulf %23, %24 : vector<1x8x32xf32>
    %26 = vector.broadcast %5 : vector<1x1x32xf32> to vector<1x8x32xf32>
    %27 = arith.addf %25, %26 : vector<1x8x32xf32>
    %28 = vector.shape_cast %27 : vector<1x8x32xf32> to vector<8x32xf32>
    %c0_13 = arith.constant 0 : index
    %c0_14 = arith.constant 0 : index
    %c0_15 = arith.constant 0 : index
    %29 = vector.load %arg8[%c0_13, %c0_14, %c0_15] : memref<1x32x96xf32, #tpu.memory_space<vmem>>, vector<1x32x96xf32>
    %30 = vector.shape_cast %29 : vector<1x32x96xf32> to vector<32x96xf32>
    %cst_16 = arith.constant dense<0.000000e+00> : vector<8x96xf32>
    %31 = tpu.matmul %28, %30, %cst_16 {dimension_numbers = #tpu.dot_dimension_numbers<[1], [0], [0], [1], [0, 0, 1, 1], [], []>} : vector<8x32xf32>, vector<32x96xf32>, vector<8x96xf32> -> vector<8x96xf32>
    %32 = vector.shape_cast %31 : vector<8x96xf32> to vector<1x8x96xf32>
    %33 = vector.extract_strided_slice %32 {offsets = [0, 0, 0], sizes = [1, 8, 8], strides = [1, 1, 1]} : vector<1x8x96xf32> to vector<1x8x8xf32>
    %34 = vector.extract_strided_slice %32 {offsets = [0, 0, 32], sizes = [1, 8, 8], strides = [1, 1, 1]} : vector<1x8x96xf32> to vector<1x8x8xf32>
    %35 = vector.extract_strided_slice %32 {offsets = [0, 0, 64], sizes = [1, 8, 8], strides = [1, 1, 1]} : vector<1x8x96xf32> to vector<1x8x8xf32>
    "tpu.trace_start"() <{level = 10 : i32, message = "bnd,bmd->bnm"}> : () -> ()
    %cst_17 = arith.constant dense<0.000000e+00> : vector<1x8x8xf32>
    %36 = tpu.matmul %33, %34, %cst_17 {dimension_numbers = #tpu.dot_dimension_numbers<[2], [2], [1], [1], [0, 0, 0, 1, 1, 1], [0], [0]>} : vector<1x8x8xf32>, vector<1x8x8xf32>, vector<1x8x8xf32> -> vector<1x8x8xf32>
    "tpu.trace_stop"() : () -> ()
    %cst_18 = arith.constant 0.353553385 : f32
    %37 = vector.broadcast %cst_18 : f32 to vector<1x8x8xf32>
    %38 = arith.mulf %36, %37 : vector<1x8x8xf32>
    %cst_19 = arith.constant dense<0xFF800000> : vector<1x8xf32>
    %39 = vector.multi_reduction <maximumf>, %38, %cst_19 [2] : vector<1x8x8xf32> to vector<1x8xf32>
    %40 = vector.shape_cast %39 : vector<1x8xf32> to vector<1x8x1xf32>
    %41 = vector.broadcast %40 : vector<1x8x1xf32> to vector<1x8x8xf32>
    %42 = arith.subf %38, %41 : vector<1x8x8xf32>
    %43 = math.exp %42 : vector<1x8x8xf32>
    %cst_20 = arith.constant dense<0.000000e+00> : vector<1x8xf32>
    %44 = vector.multi_reduction <add>, %43, %cst_20 [2] : vector<1x8x8xf32> to vector<1x8xf32>
    %45 = vector.shape_cast %44 : vector<1x8xf32> to vector<1x8x1xf32>
    %46 = tpu.reciprocal %45 {approx = true} : vector<1x8x1xf32> -> vector<1x8x1xf32>
    %47 = vector.broadcast %46 : vector<1x8x1xf32> to vector<1x8x8xf32>
    %48 = arith.mulf %43, %47 : vector<1x8x8xf32>
    "tpu.trace_start"() <{level = 10 : i32, message = "bnm,bmd->bnd"}> : () -> ()
    %cst_21 = arith.constant dense<0.000000e+00> : vector<1x8x8xf32>
    %49 = tpu.matmul %48, %35, %cst_21 {dimension_numbers = #tpu.dot_dimension_numbers<[2], [1], [1], [2], [0, 0, 0, 1, 1, 2], [0], [0]>} : vector<1x8x8xf32>, vector<1x8x8xf32>, vector<1x8x8xf32> -> vector<1x8x8xf32>
    "tpu.trace_stop"() : () -> ()
    %50 = vector.extract_strided_slice %32 {offsets = [0, 0, 8], sizes = [1, 8, 8], strides = [1, 1, 1]} : vector<1x8x96xf32> to vector<1x8x8xf32>
    %51 = vector.extract_strided_slice %32 {offsets = [0, 0, 40], sizes = [1, 8, 8], strides = [1, 1, 1]} : vector<1x8x96xf32> to vector<1x8x8xf32>
    %52 = vector.extract_strided_slice %32 {offsets = [0, 0, 72], sizes = [1, 8, 8], strides = [1, 1, 1]} : vector<1x8x96xf32> to vector<1x8x8xf32>
    "tpu.trace_start"() <{level = 10 : i32, message = "bnd,bmd->bnm"}> : () -> ()
    %cst_22 = arith.constant dense<0.000000e+00> : vector<1x8x8xf32>
    %53 = tpu.matmul %50, %51, %cst_22 {dimension_numbers = #tpu.dot_dimension_numbers<[2], [2], [1], [1], [0, 0, 0, 1, 1, 1], [0], [0]>} : vector<1x8x8xf32>, vector<1x8x8xf32>, vector<1x8x8xf32> -> vector<1x8x8xf32>
    "tpu.trace_stop"() : () -> ()
    %cst_23 = arith.constant 0.353553385 : f32
    %54 = vector.broadcast %cst_23 : f32 to vector<1x8x8xf32>
    %55 = arith.mulf %53, %54 : vector<1x8x8xf32>
    %cst_24 = arith.constant dense<0xFF800000> : vector<1x8xf32>
    %56 = vector.multi_reduction <maximumf>, %55, %cst_24 [2] : vector<1x8x8xf32> to vector<1x8xf32>
    %57 = vector.shape_cast %56 : vector<1x8xf32> to vector<1x8x1xf32>
    %58 = vector.broadcast %57 : vector<1x8x1xf32> to vector<1x8x8xf32>
    %59 = arith.subf %55, %58 : vector<1x8x8xf32>
    %60 = math.exp %59 : vector<1x8x8xf32>
    %cst_25 = arith.constant dense<0.000000e+00> : vector<1x8xf32>
    %61 = vector.multi_reduction <add>, %60, %cst_25 [2] : vector<1x8x8xf32> to vector<1x8xf32>
    %62 = vector.shape_cast %61 : vector<1x8xf32> to vector<1x8x1xf32>
    %63 = tpu.reciprocal %62 {approx = true} : vector<1x8x1xf32> -> vector<1x8x1xf32>
    %64 = vector.broadcast %63 : vector<1x8x1xf32> to vector<1x8x8xf32>
    %65 = arith.mulf %60, %64 : vector<1x8x8xf32>
    "tpu.trace_start"() <{level = 10 : i32, message = "bnm,bmd->bnd"}> : () -> ()
    %cst_26 = arith.constant dense<0.000000e+00> : vector<1x8x8xf32>
    %66 = tpu.matmul %65, %52, %cst_26 {dimension_numbers = #tpu.dot_dimension_numbers<[2], [1], [1], [2], [0, 0, 0, 1, 1, 2], [0], [0]>} : vector<1x8x8xf32>, vector<1x8x8xf32>, vector<1x8x8xf32> -> vector<1x8x8xf32>
    "tpu.trace_stop"() : () -> ()
    %67 = vector.extract_strided_slice %32 {offsets = [0, 0, 16], sizes = [1, 8, 8], strides = [1, 1, 1]} : vector<1x8x96xf32> to vector<1x8x8xf32>
    %68 = vector.extract_strided_slice %32 {offsets = [0, 0, 48], sizes = [1, 8, 8], strides = [1, 1, 1]} : vector<1x8x96xf32> to vector<1x8x8xf32>
    %69 = vector.extract_strided_slice %32 {offsets = [0, 0, 80], sizes = [1, 8, 8], strides = [1, 1, 1]} : vector<1x8x96xf32> to vector<1x8x8xf32>
    "tpu.trace_start"() <{level = 10 : i32, message = "bnd,bmd->bnm"}> : () -> ()
    %cst_27 = arith.constant dense<0.000000e+00> : vector<1x8x8xf32>
    %70 = tpu.matmul %67, %68, %cst_27 {dimension_numbers = #tpu.dot_dimension_numbers<[2], [2], [1], [1], [0, 0, 0, 1, 1, 1], [0], [0]>} : vector<1x8x8xf32>, vector<1x8x8xf32>, vector<1x8x8xf32> -> vector<1x8x8xf32>
    "tpu.trace_stop"() : () -> ()
    %cst_28 = arith.constant 0.353553385 : f32
    %71 = vector.broadcast %cst_28 : f32 to vector<1x8x8xf32>
    %72 = arith.mulf %70, %71 : vector<1x8x8xf32>
    %cst_29 = arith.constant dense<0xFF800000> : vector<1x8xf32>
    %73 = vector.multi_reduction <maximumf>, %72, %cst_29 [2] : vector<1x8x8xf32> to vector<1x8xf32>
    %74 = vector.shape_cast %73 : vector<1x8xf32> to vector<1x8x1xf32>
    %75 = vector.broadcast %74 : vector<1x8x1xf32> to vector<1x8x8xf32>
    %76 = arith.subf %72, %75 : vector<1x8x8xf32>
    %77 = math.exp %76 : vector<1x8x8xf32>
    %cst_30 = arith.constant dense<0.000000e+00> : vector<1x8xf32>
    %78 = vector.multi_reduction <add>, %77, %cst_30 [2] : vector<1x8x8xf32> to vector<1x8xf32>
    %79 = vector.shape_cast %78 : vector<1x8xf32> to vector<1x8x1xf32>
    %80 = tpu.reciprocal %79 {approx = true} : vector<1x8x1xf32> -> vector<1x8x1xf32>
    %81 = vector.broadcast %80 : vector<1x8x1xf32> to vector<1x8x8xf32>
    %82 = arith.mulf %77, %81 : vector<1x8x8xf32>
    "tpu.trace_start"() <{level = 10 : i32, message = "bnm,bmd->bnd"}> : () -> ()
    %cst_31 = arith.constant dense<0.000000e+00> : vector<1x8x8xf32>
    %83 = tpu.matmul %82, %69, %cst_31 {dimension_numbers = #tpu.dot_dimension_numbers<[2], [1], [1], [2], [0, 0, 0, 1, 1, 2], [0], [0]>} : vector<1x8x8xf32>, vector<1x8x8xf32>, vector<1x8x8xf32> -> vector<1x8x8xf32>
    "tpu.trace_stop"() : () -> ()
    %84 = vector.extract_strided_slice %32 {offsets = [0, 0, 24], sizes = [1, 8, 8], strides = [1, 1, 1]} : vector<1x8x96xf32> to vector<1x8x8xf32>
    %85 = vector.extract_strided_slice %32 {offsets = [0, 0, 56], sizes = [1, 8, 8], strides = [1, 1, 1]} : vector<1x8x96xf32> to vector<1x8x8xf32>
    %86 = vector.extract_strided_slice %32 {offsets = [0, 0, 88], sizes = [1, 8, 8], strides = [1, 1, 1]} : vector<1x8x96xf32> to vector<1x8x8xf32>
    "tpu.trace_start"() <{level = 10 : i32, message = "bnd,bmd->bnm"}> : () -> ()
    %cst_32 = arith.constant dense<0.000000e+00> : vector<1x8x8xf32>
    %87 = tpu.matmul %84, %85, %cst_32 {dimension_numbers = #tpu.dot_dimension_numbers<[2], [2], [1], [1], [0, 0, 0, 1, 1, 1], [0], [0]>} : vector<1x8x8xf32>, vector<1x8x8xf32>, vector<1x8x8xf32> -> vector<1x8x8xf32>
    "tpu.trace_stop"() : () -> ()
    %cst_33 = arith.constant 0.353553385 : f32
    %88 = vector.broadcast %cst_33 : f32 to vector<1x8x8xf32>
    %89 = arith.mulf %87, %88 : vector<1x8x8xf32>
    %cst_34 = arith.constant dense<0xFF800000> : vector<1x8xf32>
    %90 = vector.multi_reduction <maximumf>, %89, %cst_34 [2] : vector<1x8x8xf32> to vector<1x8xf32>
    %91 = vector.shape_cast %90 : vector<1x8xf32> to vector<1x8x1xf32>
    %92 = vector.broadcast %91 : vector<1x8x1xf32> to vector<1x8x8xf32>
    %93 = arith.subf %89, %92 : vector<1x8x8xf32>
    %94 = math.exp %93 : vector<1x8x8xf32>
    %cst_35 = arith.constant dense<0.000000e+00> : vector<1x8xf32>
    %95 = vector.multi_reduction <add>, %94, %cst_35 [2] : vector<1x8x8xf32> to vector<1x8xf32>
    %96 = vector.shape_cast %95 : vector<1x8xf32> to vector<1x8x1xf32>
    %97 = tpu.reciprocal %96 {approx = true} : vector<1x8x1xf32> -> vector<1x8x1xf32>
    %98 = vector.broadcast %97 : vector<1x8x1xf32> to vector<1x8x8xf32>
    %99 = arith.mulf %94, %98 : vector<1x8x8xf32>
    "tpu.trace_start"() <{level = 10 : i32, message = "bnm,bmd->bnd"}> : () -> ()
    %cst_36 = arith.constant dense<0.000000e+00> : vector<1x8x8xf32>
    %100 = tpu.matmul %99, %86, %cst_36 {dimension_numbers = #tpu.dot_dimension_numbers<[2], [1], [1], [2], [0, 0, 0, 1, 1, 2], [0], [0]>} : vector<1x8x8xf32>, vector<1x8x8xf32>, vector<1x8x8xf32> -> vector<1x8x8xf32>
    "tpu.trace_stop"() : () -> ()
    %101 = tpu.concatenate %49, %66, %83, %100 in 2 : vector<1x8x8xf32>, vector<1x8x8xf32>, vector<1x8x8xf32>, vector<1x8x8xf32> -> vector<1x8x32xf32>
    %102 = vector.shape_cast %101 : vector<1x8x32xf32> to vector<8x32xf32>
    %c0_37 = arith.constant 0 : index
    %c0_38 = arith.constant 0 : index
    %c0_39 = arith.constant 0 : index
    %103 = vector.load %arg9[%c0_37, %c0_38, %c0_39] : memref<1x32x32xf32, #tpu.memory_space<vmem>>, vector<1x32x32xf32>
    %104 = vector.shape_cast %103 : vector<1x32x32xf32> to vector<32x32xf32>
    %cst_40 = arith.constant dense<0.000000e+00> : vector<8x32xf32>
    %105 = tpu.matmul %102, %104, %cst_40 {dimension_numbers = #tpu.dot_dimension_numbers<[1], [0], [0], [1], [0, 0, 1, 1], [], []>} : vector<8x32xf32>, vector<32x32xf32>, vector<8x32xf32> -> vector<8x32xf32>
    %c0_41 = arith.constant 0 : index
    %c0_42 = arith.constant 0 : index
    %c0_43 = arith.constant 0 : index
    %106 = vector.load %arg10[%c0_41, %c0_42, %c0_43] : memref<1x1x32xf32, #tpu.memory_space<vmem>>, vector<1x1x32xf32>
    %107 = vector.shape_cast %106 : vector<1x1x32xf32> to vector<1x32xf32>
    %108 = vector.broadcast %107 : vector<1x32xf32> to vector<8x32xf32>
    %109 = arith.addf %105, %108 : vector<8x32xf32>
    %110 = vector.shape_cast %109 : vector<8x32xf32> to vector<1x8x32xf32>
    %111 = arith.addf %3, %110 : vector<1x8x32xf32>
    %c0_44 = arith.constant 0 : index
    %c0_45 = arith.constant 0 : index
    %c0_46 = arith.constant 0 : index
    %112 = vector.load %arg11[%c0_44, %c0_45, %c0_46] : memref<1x1x32xf32, #tpu.memory_space<vmem>>, vector<1x1x32xf32>
    %c0_47 = arith.constant 0 : index
    %c0_48 = arith.constant 0 : index
    %c0_49 = arith.constant 0 : index
    %113 = vector.load %arg12[%c0_47, %c0_48, %c0_49] : memref<1x1x32xf32, #tpu.memory_space<vmem>>, vector<1x1x32xf32>
    %cst_50 = arith.constant dense<0.000000e+00> : vector<1x8xf32>
    %114 = vector.multi_reduction <add>, %111, %cst_50 [2] : vector<1x8x32xf32> to vector<1x8xf32>
    %115 = vector.shape_cast %114 : vector<1x8xf32> to vector<1x8x1xf32>
    %cst_51 = arith.constant 3.200000e+01 : f32
    %116 = vector.broadcast %cst_51 : f32 to vector<1x8x1xf32>
    %117 = arith.divf %115, %116 : vector<1x8x1xf32>
    %118 = vector.broadcast %117 : vector<1x8x1xf32> to vector<1x8x32xf32>
    %119 = arith.subf %111, %118 : vector<1x8x32xf32>
    %120 = arith.mulf %119, %119 : vector<1x8x32xf32>
    %cst_52 = arith.constant dense<0.000000e+00> : vector<1x8xf32>
    %121 = vector.multi_reduction <add>, %120, %cst_52 [2] : vector<1x8x32xf32> to vector<1x8xf32>
    %122 = vector.shape_cast %121 : vector<1x8xf32> to vector<1x8x1xf32>
    %cst_53 = arith.constant 3.200000e+01 : f32
    %123 = vector.broadcast %cst_53 : f32 to vector<1x8x1xf32>
    %124 = arith.divf %122, %123 : vector<1x8x1xf32>
    %125 = vector.broadcast %117 : vector<1x8x1xf32> to vector<1x8x32xf32>
    %126 = arith.subf %111, %125 : vector<1x8x32xf32>
    %cst_54 = arith.constant 9.99999974E-6 : f32
    %127 = vector.broadcast %cst_54 : f32 to vector<1x8x1xf32>
    %128 = arith.addf %124, %127 : vector<1x8x1xf32>
    %129 = math.rsqrt %128 : vector<1x8x1xf32>
    %130 = vector.broadcast %129 : vector<1x8x1xf32> to vector<1x8x32xf32>
    %131 = arith.mulf %126, %130 : vector<1x8x32xf32>
    %132 = vector.broadcast %112 : vector<1x1x32xf32> to vector<1x8x32xf32>
    %133 = arith.mulf %131, %132 : vector<1x8x32xf32>
    %134 = vector.broadcast %113 : vector<1x1x32xf32> to vector<1x8x32xf32>
    %135 = arith.addf %133, %134 : vector<1x8x32xf32>
    %136 = vector.shape_cast %135 : vector<1x8x32xf32> to vector<8x32xf32>
    %c0_55 = arith.constant 0 : index
    %c0_56 = arith.constant 0 : index
    %c0_57 = arith.constant 0 : index
    %137 = vector.load %arg13[%c0_55, %c0_56, %c0_57] : memref<1x32x64xf32, #tpu.memory_space<vmem>>, vector<1x32x64xf32>
    %138 = vector.shape_cast %137 : vector<1x32x64xf32> to vector<32x64xf32>
    %cst_58 = arith.constant dense<0.000000e+00> : vector<8x64xf32>
    %139 = tpu.matmul %136, %138, %cst_58 {dimension_numbers = #tpu.dot_dimension_numbers<[1], [0], [0], [1], [0, 0, 1, 1], [], []>} : vector<8x32xf32>, vector<32x64xf32>, vector<8x64xf32> -> vector<8x64xf32>
    %c0_59 = arith.constant 0 : index
    %c0_60 = arith.constant 0 : index
    %c0_61 = arith.constant 0 : index
    %140 = vector.load %arg14[%c0_59, %c0_60, %c0_61] : memref<1x1x64xf32, #tpu.memory_space<vmem>>, vector<1x1x64xf32>
    %141 = vector.shape_cast %140 : vector<1x1x64xf32> to vector<1x64xf32>
    %142 = vector.broadcast %141 : vector<1x64xf32> to vector<8x64xf32>
    %143 = arith.addf %139, %142 : vector<8x64xf32>
    %cst_62 = arith.constant 0.000000e+00 : f32
    %144 = vector.broadcast %cst_62 : f32 to vector<8x64xf32>
    %145 = arith.maximumf %143, %144 : vector<8x64xf32>
    %c0_63 = arith.constant 0 : index
    %c0_64 = arith.constant 0 : index
    %c0_65 = arith.constant 0 : index
    %146 = vector.load %arg15[%c0_63, %c0_64, %c0_65] : memref<1x64x32xf32, #tpu.memory_space<vmem>>, vector<1x64x32xf32>
    %147 = vector.shape_cast %146 : vector<1x64x32xf32> to vector<64x32xf32>
    %cst_66 = arith.constant dense<0.000000e+00> : vector<8x32xf32>
    %148 = tpu.matmul %145, %147, %cst_66 {dimension_numbers = #tpu.dot_dimension_numbers<[1], [0], [0], [1], [0, 0, 1, 1], [], []>} : vector<8x64xf32>, vector<64x32xf32>, vector<8x32xf32> -> vector<8x32xf32>
    %c0_67 = arith.constant 0 : index
    %c0_68 = arith.constant 0 : index
    %c0_69 = arith.constant 0 : index
    %149 = vector.load %arg16[%c0_67, %c0_68, %c0_69] : memref<1x1x32xf32, #tpu.memory_space<vmem>>, vector<1x1x32xf32>
    %150 = vector.shape_cast %149 : vector<1x1x32xf32> to vector<1x32xf32>
    %151 = vector.broadcast %150 : vector<1x32xf32> to vector<8x32xf32>
    %152 = arith.addf %148, %151 : vector<8x32xf32>
    %153 = vector.shape_cast %152 : vector<8x32xf32> to vector<1x8x32xf32>
    %154 = arith.addf %111, %153 : vector<1x8x32xf32>
    %c0_70 = arith.constant 0 : index
    %c0_71 = arith.constant 0 : index
    %c0_72 = arith.constant 0 : index
    %155 = vector.load %arg18[%c0_70, %c0_71, %c0_72] : memref<1x8x32xf32, #tpu.memory_space<vmem>>, vector<1x8x32xf32>
    tpu.vector_store %arg18[%c0_70, %c0_71, %c0_72], %154 {strides = array<i32>} : memref<1x8x32xf32, #tpu.memory_space<vmem>>, vector<1x8x32xf32>,
    %c1_i32 = arith.constant 1 : i32
    %156 = arith.cmpi eq, %arg1, %c1_i32 : i32
    %157 = arith.extui %156 : i1 to i32
    %c0_i32_73 = arith.constant 0 : i32
    %158 = arith.cmpi ne, %157, %c0_i32_73 : i32
    scf.if %158 {
      %c0_74 = arith.constant 0 : index
      %c0_75 = arith.constant 0 : index
      %c0_76 = arith.constant 0 : index
      %159 = vector.load %arg17[%c0_74, %c0_75, %c0_76] : memref<1x8x32xf32, #tpu.memory_space<vmem>>, vector<1x8x32xf32>
      tpu.vector_store %arg17[%c0_74, %c0_75, %c0_76], %154 {strides = array<i32>} : memref<1x8x32xf32, #tpu.memory_space<vmem>>, vector<1x8x32xf32>,
    } else {
    }
    return
  }
  func.func @transform_0(%arg0: i32, %arg1: i32) -> (i32, i32, i32) {
    %c0_i32 = arith.constant 0 : i32
    %c0_i32_0 = arith.constant 0 : i32
    %c0_i32_1 = arith.constant 0 : i32
    return %arg0, %c0_i32, %c0_i32_0 : i32, i32, i32
  }
  func.func @transform_1(%arg0: i32, %arg1: i32) -> (i32, i32) {
    %c0_i32 = arith.constant 0 : i32
    %c0_i32_0 = arith.constant 0 : i32
    %c0_i32_1 = arith.constant 0 : i32
    return %c0_i32, %c0_i32_0 : i32, i32
  }
  func.func @transform_2(%arg0: i32, %arg1: i32) -> (i32, i32) {
    %c0_i32 = arith.constant 0 : i32
    %c0_i32_0 = arith.constant 0 : i32
    %c0_i32_1 = arith.constant 0 : i32
    return %c0_i32, %c0_i32_0 : i32, i32
  }
  func.func @transform_3(%arg0: i32, %arg1: i32) -> (i32, i32) {
    %c0_i32 = arith.constant 0 : i32
    %c0_i32_0 = arith.constant 0 : i32
    %c0_i32_1 = arith.constant 0 : i32
    return %c0_i32, %c0_i32_0 : i32, i32
  }
  func.func @transform_4(%arg0: i32, %arg1: i32) -> (i32, i32, i32) {
    %c0_i32 = arith.constant 0 : i32
    %c0_i32_0 = arith.constant 0 : i32
    %c0_i32_1 = arith.constant 0 : i32
    return %arg1, %c0_i32, %c0_i32_0 : i32, i32, i32
  }
  func.func @transform_5(%arg0: i32, %arg1: i32) -> (i32, i32, i32) {
    %c0_i32 = arith.constant 0 : i32
    %c0_i32_0 = arith.constant 0 : i32
    %c0_i32_1 = arith.constant 0 : i32
    return %arg1, %c0_i32, %c0_i32_0 : i32, i32, i32
  }
  func.func @transform_6(%arg0: i32, %arg1: i32) -> (i32, i32, i32) {
    %c0_i32 = arith.constant 0 : i32
    %c0_i32_0 = arith.constant 0 : i32
    %c0_i32_1 = arith.constant 0 : i32
    return %arg1, %c0_i32, %c0_i32_0 : i32, i32, i32
  }
  func.func @transform_7(%arg0: i32, %arg1: i32) -> (i32, i32, i32) {
    %c0_i32 = arith.constant 0 : i32
    %c0_i32_0 = arith.constant 0 : i32
    %c0_i32_1 = arith.constant 0 : i32
    return %arg1, %c0_i32, %c0_i32_0 : i32, i32, i32
  }
  func.func @transform_8(%arg0: i32, %arg1: i32) -> (i32, i32, i32) {
    %c0_i32 = arith.constant 0 : i32
    %c0_i32_0 = arith.constant 0 : i32
    %c0_i32_1 = arith.constant 0 : i32
    return %arg1, %c0_i32, %c0_i32_0 : i32, i32, i32
  }
  func.func @transform_9(%arg0: i32, %arg1: i32) -> (i32, i32, i32) {
    %c0_i32 = arith.constant 0 : i32
    %c0_i32_0 = arith.constant 0 : i32
    %c0_i32_1 = arith.constant 0 : i32
    return %arg1, %c0_i32, %c0_i32_0 : i32, i32, i32
  }
  func.func @transform_10(%arg0: i32, %arg1: i32) -> (i32, i32, i32) {
    %c0_i32 = arith.constant 0 : i32
    %c0_i32_0 = arith.constant 0 : i32
    %c0_i32_1 = arith.constant 0 : i32
    return %arg1, %c0_i32, %c0_i32_0 : i32, i32, i32
  }
  func.func @transform_11(%arg0: i32, %arg1: i32) -> (i32, i32, i32) {
    %c0_i32 = arith.constant 0 : i32
    %c0_i32_0 = arith.constant 0 : i32
    %c0_i32_1 = arith.constant 0 : i32
    return %arg1, %c0_i32, %c0_i32_0 : i32, i32, i32
  }
  func.func @transform_12(%arg0: i32, %arg1: i32) -> (i32, i32, i32) {
    %c0_i32 = arith.constant 0 : i32
    %c0_i32_0 = arith.constant 0 : i32
    %c0_i32_1 = arith.constant 0 : i32
    return %arg1, %c0_i32, %c0_i32_0 : i32, i32, i32
  }
  func.func @transform_13(%arg0: i32, %arg1: i32) -> (i32, i32, i32) {
    %c0_i32 = arith.constant 0 : i32
    %c0_i32_0 = arith.constant 0 : i32
    %c0_i32_1 = arith.constant 0 : i32
    return %arg1, %c0_i32, %c0_i32_0 : i32, i32, i32
  }
  func.func @transform_14(%arg0: i32, %arg1: i32) -> (i32, i32, i32) {
    %c0_i32 = arith.constant 0 : i32
    %c0_i32_0 = arith.constant 0 : i32
    %c0_i32_1 = arith.constant 0 : i32
    return %arg1, %c0_i32, %c0_i32_0 : i32, i32, i32
  }
  func.func @transform_15(%arg0: i32, %arg1: i32) -> (i32, i32, i32) {
    %c0_i32 = arith.constant 0 : i32
    %c0_i32_0 = arith.constant 0 : i32
    %c0_i32_1 = arith.constant 0 : i32
    return %arg0, %c0_i32, %c0_i32_0 : i32, i32, i32
  }
}

</mosaic_0001>

<bundles_post_ra>
// kernel: mapping_network.1
= control target key start
LH: loop header
LB: loop body
LE: loop exit
PB: predicated region body
PF: predicated region fallthrough
CT: control target
= control target key end

     0   :  { %s2521_s0 = inlined_call_operand.hbm [shape: f32[2,1,32], index: 0, kind: input, shape index: {}]   ;;  %s2522_s1 = inlined_call_operand.hbm [shape: f32[32,128], index: 1, kind: input, shape index: {}]   ;;  %s2523_s2 = inlined_call_operand.hbm [shape: f32[1,128], index: 2, kind: input, shape index: {}]   ;;  %s2524_s3 = inlined_call_operand.hbm [shape: f32[4,32], index: 3, kind: input, shape index: {}]   ;;  %s2525_s4 = inlined_call_operand.vmem [shape: f32[2,1,32], index: 4, kind: input, shape index: {}]   ;;  %s2526_s5 = inlined_call_operand.vmem [shape: f32[2,1,32], index: 5, kind: input, shape index: {}]   ;;  %s2527_s6 = inlined_call_operand.vmem [shape: f32[2,32,96], index: 6, kind: input, shape index: {}]   ;;  %s2528_s7 = inlined_call_operand.vmem [shape: f32[2,32,32], index: 7, kind: input, shape index: {}]   ;;  %s2529_s8 = inlined_call_operand.vmem [shape: f32[2,1,32], index: 8, kind: input, shape index: {}]   ;;  %s2530_s9 = inlined_call_operand.vmem [shape: f32[2,1,32], index: 9, kind: input, shape index: {}]   ;;  %s2531_s10 = inlined_call_operand.hbm [shape: f32[2,1,32], index: 10, kind: input, shape index: {}]   ;;  %s2532_s11 = inlined_call_operand.vmem [shape: f32[2,32,64], index: 11, kind: input, shape index: {}]   ;;  %s2533_s12 = inlined_call_operand.vmem [shape: f32[2,1,64], index: 12, kind: input, shape index: {}]   ;;  %s2534_s13 = inlined_call_operand.vmem [shape: f32[2,64,32], index: 13, kind: input, shape index: {}]   ;;  %s2535_s14 = inlined_call_operand.vmem [shape: f32[2,1,32], index: 14, kind: input, shape index: {}]   ;;  %s2536_s15 = inlined_call_operand.vmem [shape: f32[2,8,32], index: 15, kind: output, shape index: {}]  }
   0x1   :  { %2546 = sst [smem:[#allocation25_spill]] %s2521_s0 }
   0x2   :  { %2547 = sst [smem:[#allocation26_spill]] %s2522_s1 }
   0x3   :  { %2548 = sst [smem:[#allocation27_spill]] %s2523_s2 }
   0x4   :  { %2549 = sst [smem:[#allocation28_spill]] %s2524_s3 }
   0x5   :  { %2550 = sst [smem:[#allocation29_spill]] %s2527_s6 }
   0x6   :  { %2551 = sst [smem:[#allocation30_spill]] %s2528_s7 }
   0x7   :  { %2552 = sst [smem:[#allocation31_spill]] %s2529_s8 }
   0x8   :  { %2553 = sst [smem:[#allocation32_spill]] %s2530_s9 }
   0x9   :  { %2554 = sst [smem:[#allocation33_spill]] %s2531_s10 }
   0xa   :  { %2555 = sst [smem:[#allocation34_spill]] %s2532_s11 }
   0xb   :  { %2556 = sst [smem:[#allocation35_spill]] %s2533_s12 }
   0xc   :  { %2557 = sst [smem:[#allocation36_spill]] %s2534_s13 }
   0xd   :  { %2558 = sst [smem:[#allocation37_spill]] %s2535_s14 }
   0xe   :  { %2559 = sst [smem:[#allocation38_spill]] %s2536_s15 }
   0xf   :  { %20 = vsyncpa [#allocation4], 0 }
  0x10   :  { %22 = vsyncpa [#allocation4 + $0x1], 0 }
  0x11   :  { %23 = vsyncpa [#allocation6], 0 }
  0x12   :  { %24 = vsyncpa [#allocation9], 0  ;;  %s2125_s18 = smov 0   ;;  %s2127_s19 = smov 0  }
  0x13   :  { %s2129_s20 = smov 0   ;;  %s2131_s21 = smov 0  }
  0x14   :  { %s2133_s22 = smov 0   ;;  %s2135_s23 = smov 0  }
  0x15   :  { %s2137_s24 = smov 0   ;;  %s2139_s25 = smov 0  }
  0x16   :  { %s2141_s26 = smov 0   ;;  %s2143_s27 = smov 0  }
  0x17   :  { %s2145_s28 = smov 0  }
  0x18 LB: > { %2560 = sst [smem:[#allocation15_spill]] %s1982_s19  ;;  %s2537_s29 = sadd.s32 4294967295, %s2018_s28   ;;  %s2018_s28 = sphi %s2145_s28, %s30_s28   ;;  %s2014_s27 = sphi %s2143_s27, %s2610_s27   ;;  %s2010_s26 = sphi %s2141_s26, %s2609_s26   ;;  %s2006_s25 = sphi %s2139_s25, %s2608_s25   ;;  %s2002_s24 = sphi %s2137_s24, %s2607_s24   ;;  %s1998_s23 = sphi %s2135_s23, %s2606_s23   ;;  %s1994_s22 = sphi %s2133_s22, %s2605_s22   ;;  %s1990_s21 = sphi %s2131_s21, %s2604_s21   ;;  %s1986_s20 = sphi %s2129_s20, %s2603_s20   ;;  %s1982_s19 = sphi %s2127_s19, %s2602_s19   ;;  %s1978_s18 = sphi %s2125_s18, %s2601_s18  }
  0x19   : > { %2561 = sst [smem:[#allocation16_spill]] %s1986_s20  ;;  %p1541_p0 = scmp.ge.s32.totalorder %s2018_s28, 1 }
  0x1a   : > { %2562 = sst [smem:[#allocation17_spill]] %s1994_s22  ;;  %p2184_p1 = scmp.eq.s32.totalorder %s2537_s29, 0 }
  0x1b   : > { %2563 = sst [smem:[#allocation18_spill]] %s1998_s23  ;;  %p448_p2 = scmp.lt.s32.totalorder %s2018_s28, 5 }
  0x1c   : > { %2564 = sst [smem:[#allocation19_spill]] %s2010_s26  ;;  %s2020_s29 = smov [#allocation5]  }
  0x1d   : > { %2565 = sst [smem:[#allocation20_spill]] %s2014_s27  ;;  %p2192_p3 = pnand %p1541_p0, %p448_p2 }
  0x1e   : > { %s2567_s1 = sld [smem:[#allocation26_spill]]  ;;  %s461_s13 = sshll.u32 %s2020_s29, 4  ;;  %s462_s13 = int_to_ptr.vmem [resolvable:$true] %s461_s13 }
  0x1f   : > { %p1600_p4 = pneg %p2192_p3  ;;  %s2021_s17 = smov 128  }
  0x20   : > { %p56_p6 = scmp.ne.s32.totalorder %s1998_s23, %s1994_s22  ;;  %p57_p7 = scmp.eq.s32.totalorder %s2018_s28, 0 }
  0x21   : > { %p2200_p5 = pnand %p1600_p4, %p2184_p1  ;;  %p62_p8 = scmp.ne.s32.totalorder %s1994_s22, %s1990_s21 }
  0x22   : > { %p1620_p9 = scmp.lt.s32.totalorder %s2018_s28, 4  ;;  %s499_s29 = sand.u32 1, %s2018_s28  }
  0x23   : > { %p58_p10 = por %p57_p7, %p56_p6  ;;  %p2219_p11 = por %p2184_p1, %p62_p8 }
  0x24   : > { %s459_s15 = sshll.u32 %s2567_s1, 4  ;;  %s2022_s1 = smov 8   ;;  %s460_s15 = int_to_ptr.hbm [resolvable:$true] %s459_s15 }
  0x25   : > { %1603 = dma.hbm_to_vmem [thread:$0]  (!%p2200_p5), %s460_s15, 512, %s462_s13, [#allocation6], %s2021_s17, %s2021_s17, %s2022_s1  }
  0x26   : > { %s501_s7 = sand.u32 1, %s1998_s23   ;;  %s2571_s0 = sld [smem:[#allocation25_spill]] }
  0x27   : > { %s502_s15 = scalar_lea.vmem [#allocation3], %s501_s7  ;;  %p1611_p12 = pnand %p1620_p9, %p58_p10 }
  0x28   : > { %s509_s17 = sshll.u32 %s502_s15, 4  ;;  %s2572_s2 = sld [smem:[#allocation27_spill]]  ;;  %s510_s17 = int_to_ptr.vmem [resolvable:$true] %s509_s17 }
  0x29   : > { %s2023_s6 = smov [#allocation7]   ;;  %s2233_s7 = scalar_lea.sflag [#allocation4], %s499_s29 }
  0x2a   : > { %s476_s8 = sshll.u32 %s2023_s6, 4  ;;  %s2573_s3 = sld [smem:[#allocation28_spill]]  ;;  %s477_s8 = int_to_ptr.vmem [resolvable:$true] %s476_s8 }
  0x2b   : > { %s2024_s21 = smov [#allocation8]   ;;  %s39_s29 = sadd.s32 1, %s2010_s26 }
  0x2c   : > { %s505_s1 = scalar_lea.hbm %s2571_s0, %s2014_s27  ;;  %s488_s6 = sshll.u32 %s2024_s21, 4  ;;  %s489_s6 = int_to_ptr.vmem [resolvable:$true] %s488_s6 }
  0x2d   : > { %s507_s13 = sshll.u32 %s505_s1, 4  ;;  %p40_p13 = scmp.ge.s32.totalorder %s39_s29, 2  ;;  %s508_s13 = int_to_ptr.hbm [resolvable:$true] %s507_s13 }
  0x2e   : > { %s474_s12 = sshll.u32 %s2572_s2, 4  ;;  %p301_p0 = scmp.ne.s32.totalorder %s1986_s20, %s1982_s19  ;;  %s475_s12 = int_to_ptr.hbm [resolvable:$true] %s474_s12 }
  0x2f   : > { %1613 = dma.hbm_to_vmem [thread:$0]  (!%p1611_p12), %s508_s13, 16, %s510_s17, %s2233_s7  }
  0x30   : > { %s486_s11 = sshll.u32 %s2573_s3, 4  ;;  %s294_s13 = sadd.s32 1, %s1986_s20  ;;  %s487_s11 = int_to_ptr.hbm [resolvable:$true] %s486_s11 }
  0x31   : > { %1606 = dma.hbm_to_vmem [thread:$0]  (!%p2200_p5), %s475_s12, 16, %s477_s8, [#allocation6]  }
  0x32   : > { %1609 = dma.hbm_to_vmem [thread:$0]  (!%p2200_p5), %s487_s11, 64, %s489_s6, [#allocation9]  }
  0x33   : > { %p307_p2 = scmp.ne.s32.totalorder %s1982_s19, %s1978_s18  ;;  %s558_s17 = sand.u32 1, %s1986_s20  }
  0x34   : > { %s2612_s29 = smov (%p40_p13, %s39_s29), 0  ;;  %s2575_s1 = sadd.s32 1, %s2014_s27 }
  0x35   : > { %2574 = sst [smem:[#allocation21_spill]] %s2612_s29  ;;  %s2614_s1 = smov (!%p40_p13, %s2575_s1), %s2014_s27 }
  0x36   : > { %s291_s12 = ssub.s32 %s2010_s26, %s2612_s29  ;;  %p2259_p4 = por %p301_p0, %p57_p7 }
  0x37   : > { %p44_p5 = scmp.ge.s32.totalorder %s2614_s1, 2  ;;  %p292_p6 = scmp.eq.s32.totalorder %s291_s12, 0 }
  0x38   : > { %p2265_p8 = por %p307_p2, %p2184_p1  ;;  %s2580_s10 = sld [smem:[#allocation33_spill]] }
  0x39   : > { %s2616_s1 = smov (%p44_p5, %s2614_s1), 0  ;;  %s559_s2 = scalar_lea.vmem [#allocation10], %s558_s17 }
  0x3a   : > { %2578 = sst [smem:[#allocation22_spill]] %s2616_s1  ;;  %s46_s15 = ssub.s32 %s2014_s27, %s2616_s1 }
  0x3b   : > { %s2272_s8 = scalar_select %p292_p6, %s1986_s20, %s294_s13  }
  0x3c   : > { %p47_p7 = scmp.eq.s32.totalorder %s46_s15, 0  ;;  %s566_s12 = sshll.u32 %s559_s2, 4  ;;  %s567_s12 = int_to_ptr.vmem [resolvable:$true] %s566_s12 }
  0x3d   : > { %2579 = sst [smem:[#allocation23_spill]] %s2272_s8  ;;  %s2581_s3 = sadd.s32 1, %s1998_s23 }
  0x3e   : > { %s562_s6 = scalar_lea.hbm %s2580_s10, %s2010_s26  ;;  %p1614_p10 = pnand %p1620_p9, %p2259_p4 }
  0x3f   : > { %s564_s0 = sshll.u32 %s562_s6, 4  ;;  %603 = sbr.rel (%p2192_p3) target bundleno = 2592 (0xa20), region = 80  ;;  %s565_s0 = int_to_ptr.hbm [resolvable:$true] %s564_s0 }
  0x40   : > { %s2283_s29 = scalar_select %p47_p7, %s1998_s23, %s2581_s3  }
  0x41   : > { %1616 = dma.hbm_to_vmem [thread:$0]  (!%p1614_p10), %s565_s0, 16, %s567_s12, %s2233_s7  }
  0x42   : > { %2582 = sst [smem:[#allocation24_spill]] %s2283_s29  ;;  %s2583_s13 = sadd.s32 (!%p2192_p3), 4294967295, %s2018_s28  }
  0x43   : > { %s605_s15 = sand.u32 (!%p2192_p3), 1, %s2583_s13   ;;  %s607_s11 = sand.u32 (!%p2192_p3), 1, %s1994_s22  }
  0x44   : > { %s606_s21 = scalar_lea.sflag [#allocation4], %s605_s15  ;;  %s2295_s17 = scalar_lea.vmem [#allocation3], %s607_s11 }
  0x45   : > { %1961 = dma.done.wait (%p2219_p11), %s606_s21, 16  }
  0x46   : > { %1963 = vsyncadd (%p2219_p11), %s606_s21, 4294967280 }
  0x47   : > { %1965 = dma.done.wait (%p2184_p1), [#allocation6], 528  }
  0x48   : > { %1967 = vsyncadd (%p2184_p1), [#allocation6], 4294966768 }
  0x49   : > { %1969 = dma.done.wait (%p2184_p1), [#allocation9], 64  }
  0x4a   : > { %1971 = vsyncadd (%p2184_p1), [#allocation9], 4294967232  ;;  %s631_s0 = sand.u32 1, %s1982_s19  }
  0x4b   : > { %s2310_s2 = scalar_lea.vmem [#allocation10], %s631_s0 }
  0x4c   : > { %1973 = dma.done.wait (%p2265_p8), %s606_s21, 16  }
  0x4d   : > { %1975 = vsyncadd (%p2265_p8), %s606_s21, 4294967280  ;;  %p720_p3 = scmp.lt.s32.totalorder %s2002_s24, 1  ;;  %p758_p9 = scmp.lt.s32.totalorder %s2006_s25, 1 }
  0x4e   : > { %s2585_s10 = sld [smem:[#allocation29_spill]]  ;;  %p1559_p1 = scmp.ne.s32.totalorder %s2002_s24, 0 }
  0x4f   : > { %s2319_s3 = scalar_select %p720_p3, %s2002_s24, 1 }
  0x50   : > { %s2618_s25 = smov (!%p758_p9, %s2006_s25), 1  ;;  %s2586_s29 = sld [smem:[#allocation30_spill]] }
  0x51   : > { %s1580_s6 = sshll.u32 %s2319_s3, 5  ;;  %s2588_s22 = sld [smem:[#allocation34_spill]] }
  0x52   : > { %s2589_s15 = sld [smem:[#allocation35_spill]]  ;;  %s1558_s30 = sshll.u32 %s2618_s25, 3 }
  0x53   : > { %s2590_s20 = sld [smem:[#allocation36_spill]]  ;;  %s2027_s25 = smov (!%p1559_p1), 96  }
  0x54   : > { %s2338_s1 = scalar_lea.vmem %s2585_s10, %s1580_s6  ;;  %s1583_s10 = sshll.u32 %s2319_s3, 6 }
  0x55   : > { %s2591_s19 = sld [smem:[#allocation37_spill]] }
  0x56   : > { %s2343_s23 = scalar_lea.vmem %s2586_s29, %s1580_s6  ;;  %s2592_s18 = sld [smem:[#allocation38_spill]] }
  0x57   : > { %s2352_s8 = scalar_lea.vmem %s2588_s22, %s1580_s6 }
  0x58   : > { %s749_s21 = scalar_lea.vmem %s2589_s15, %s2319_s3  ;;  %765 = sbr.rel (%p1559_p1) target bundleno = 362 (0x16a), region = 104 }
  0x59   : > { %s2362_s26 = scalar_lea.vmem %s2590_s20, %s1583_s10  ;;  %s2026_s20 = smov (!%p1559_p1), 32  }
  0x5b   : > { %s757_s9 = scalar_lea.vmem %s2591_s19, %s2319_s3  ;;  %s2025_s19 = smov (!%p1559_p1), 64  }
  0x5c   : > { %s2371_s22 = scalar_lea.vmem %s2592_s18, %s1558_s30 }
  0x5d   : > { %v770_v0 = vld [vmem:[#allocation5 + $0x18] sm:$0xff]  ;;  %v769_v1 = vld [vmem:[#allocation5 + $0x10] sm:$0xff]  ;;  %v768_v2 = vld [vmem:[#allocation5 + $0x8] sm:$0xff]  ;;  %vm772_vm0 = vcmask 261120   ;;  %v2028_v10 = vmov 1983009808  }
  0x5e   : > { %788 = vmatpush.msra.mxu0 %v770_v0  ;;  %v767_v3 = vld [vmem:[#allocation5] sm:$0xff]  ;;  %v766_v4 = vld [vmem:[%s2295_s17] sm:$0x1]  ;;  %v810_v11 = vunpack.c.l.s4 %v2028_v10  ;;  %vm807_vm1 = vcmask 1047556   ;;  %v2029_v14 = vmov 1934713408  }
  0x5f   : > { %v771_v5 = vld [vmem:[#allocation7] sm:$0x1]  ;;  %v822_v15 = vunpack.c.l.s4 %v2029_v14  ;;  %v825_v20 = vld [vmem:[#allocation8] sm:$0xf]  ;;  %vm829_vm2 = vcmask 1043456  }
  0x60   : > { %789 = vmatpush.msra.mxu0 %v769_v1  ;;  %v811_v16 = vunpack.c.0.s8 %v810_v11  ;;  %v827_v25 = vrot.slane %v825_v20, 4 }
  0x61   : > { %v823_v22 = vunpack.c.0.s8 %v822_v15 }
  0x62   : > { %790 = vmatpush.msra.mxu0 %v768_v2 }
  0x64   : > { %791 = vmatpush.msra.mxu0 %v767_v3 }
  0x65   : > { %1560 = vmatmul.msk.f32.vlgmr.msra.gmra.mxu0 %vm772_vm0, %v766_v4 }
  0xe2   : > { %v793_v6 = vpop.f32.mrf.mxu0 }
  0xe3   : > { %v794_v7 = vadd.f32 %v793_v6, %v771_v5 }
  0xe5   : > { %800 = vrot.lane.b32.xlu1 %v794_v7, %s2025_s19  ;;  %803 = vrot.lane.b32.xlu0 %v794_v7, %s2026_s20 }
  0xed   : > { %797 = vrot.lane.b32.xlu0 %v794_v7, %s2027_s25 }
 0x157   : > { %v804_v8 = vpop.permute.xlu0 %803  ;;  %v801_v9 = vpop.permute.xlu1 %800 }
 0x158   : > { %v806_v12 = vrot.slane %v801_v9, 4  ;;  %v813_v13 = vrot.slane %v804_v8, 4 }
 0x15a   : > { %v808_v18 = vsel %vm807_vm1, %v806_v12, %v794_v7 }
 0x15b   : > { %v812_v23 = vperm.slane %v808_v18, %v811_v16 }
 0x15f   : > { %v798_v17 = vpop.permute.xlu0 %797 }
 0x160   : > { %v814_v19 = vsel %vm807_vm1, %v813_v13, %v798_v17 }
 0x161   : > { %v818_v21 = vperm.slane %v814_v19, %v811_v16 }
 0x163   : > { %v819_v24 = vrot.slane %v818_v21, 4 }
 0x165   : > { %v820_v26 = vsel %vm807_vm1, %v819_v24, %v812_v23 }
 0x166   : > { %v824_v27 = vperm.slane %v820_v26, %v823_v22 }
 0x168   : > { %v830_v28 = vsel %vm829_vm2, %v824_v27, %v827_v25 }
 0x169   : > { %831 = vst.msk [vmem:[#allocation2] sm:$0xff] %vm772_vm0, %v830_v28 }
 0x16a PF: > { %vm835_vm3 = vcmask 261120   ;;  %v2030_v31 = vmov 32.0   ;;  %v876_v43 = vld [vmem:[%s2338_s1 + $0x18] sm:$0xff]  ;;  %v875_v44 = vld [vmem:[%s2338_s1 + $0x10] sm:$0xff]  ;;  %v874_v45 = vld [vmem:[%s2338_s1 + $0x8] sm:$0xff]  ;;  %s2593_s6 = scalar_lea.vmem %s2525_s4, %s2319_s3  ;;  %s2594_s16 = scalar_lea.vmem %s2526_s5, %s2319_s3  ;;  %vm903_vm8 = vcmask 64512  }
 0x16b   : > { %1744 = vrcp.f32 %v2030_v31  ;;  %892 = vmatpush.msra.mxu0 %v876_v43  ;;  %v873_v46 = vld [vmem:[%s2338_s1] sm:$0xff]  ;;  %s2031_s12 = smov 64   ;;  %s2032_s13 = smov 120   ;;  %vm1177_vm9 = vcmask 130048   ;;  %vm1179_vm10 = vcmask 195584   ;;  %vm1289_vm14 = vcmask 523264  }
 0x16c   : > { %v1737_v56 = vld [vmem:[%s2593_s6] ss:$0 sm:$0xff]  ;;  %s2033_s15 = smov 96   ;;  %s2034_s10 = smov 72  }
 0x16d   : > { %893 = vmatpush.msra.mxu0 %v875_v44  ;;  %v1738_v59 = vld [vmem:[%s2594_s16] ss:$0 sm:$0xff]  ;;  %s2035_s0 = smov 88   ;;  %s2036_s27 = smov 56  }
 0x16e   : > { %s2037_s29 = smov 80   ;;  %s2038_s30 = smov 104  }
 0x16f   : > { %894 = vmatpush.msra.mxu0 %v874_v45  ;;  %s2039_s14 = smov 112   ;;  %s2040_s18 = smov 48  }
 0x170   : > { %v2377_v29 = vld [vmem:[#allocation2] sm:$0xff]  ;;  %s2041_s19 = smov 8   ;;  %s2042_s20 = smov 40  }
 0x171   : > { %v836_v30 = vsel %vm835_vm3, %v2377_v29, 0.0  ;;  %v1745_v32 = vpop.eup %1744  ;;  %895 = vmatpush.msra.mxu0 %v873_v46  ;;  %s2043_s25 = smov 16   ;;  %s2044_s17 = smov 24  }
 0x172   : > { %837 = vadd.xlane.f32.xlu0 %v836_v30  ;;  %v840_v33 = vmul.f32 32.0, %v1745_v32  ;;  %vm844_vm4 = vweird.f32 %v1745_v32  ;;  %s2595_s11 = sld [smem:[#allocation31_spill]]  ;;  %p1577_p11 = scmp.ne.s32.totalorder %s2002_s24, 1 }
 0x173   : > { %s2597_s16 = sld [smem:[#allocation32_spill]] }
 0x174   : > { %v841_v34 = vsub.f32 1.0, %v840_v33 }
 0x176   : > { %v842_v35 = vmul.f32 %v1745_v32, %v841_v34 }
 0x178   : > { %v843_v36 = vadd.f32 %v1745_v32, %v842_v35  ;;  %s2596_s7 = scalar_lea.vmem %s2595_s11, %s2319_s3 }
 0x17a   : > { %v2381_v37 = vsel %vm844_vm4, %v1745_v32, %v843_v36 }
 0x1e5   : > { %v838_v38 = vpop.xlane.xlu0 %837 }
 0x1e6   : > { %v846_v39 = vmul.f32 %v2381_v37, %v838_v38 }
 0x1e8   : > { %v847_v40 = vsub.f32 %v2377_v29, %v846_v39 }
 0x1ea   : > { %v848_v41 = vmul.f32 %v847_v40, %v847_v40 }
 0x1ec   : > { %v849_v42 = vsel %vm835_vm3, %v848_v41, 0.0 }
 0x1ed   : > { %850 = vadd.xlane.f32.xlu0 %v849_v42 }
 0x260   : > { %v851_v47 = vpop.xlane.xlu0 %850 }
 0x261   : > { %v852_v48 = vmul.f32 %v851_v47, %v2381_v37 }
 0x263   : > { %v853_v49 = vadd.f32 1e-05, %v852_v48 }
 0x265   : > { %1746 = vrsqrt.f32 %v853_v49  ;;  %vm860_vm6 = vweird.f32 %v853_v49 }
 0x26b   : > { %v1747_v50 = vpop.eup %1746 }
 0x26c   : > { %v855_v51 = vmul.f32 %v1747_v50, %v853_v49  ;;  %vm861_vm5 = vweird.f32 %v1747_v50 }
 0x26d   : > { %vm862_vm7 = vmor %vm860_vm6, %vm861_vm5 }
 0x26e   : > { %v856_v52 = vmul.f32 %v1747_v50, %v855_v51 }
 0x270   : > { %v857_v53 = vmul.f32 0.5, %v856_v52 }
 0x272   : > { %v858_v54 = vsub.f32 1.5, %v857_v53 }
 0x274   : > { %v859_v55 = vmul.f32 %v1747_v50, %v858_v54 }
 0x276   : > { %v863_v57 = vsel %vm862_vm7, %v1747_v50, %v859_v55 }
 0x277   : > { %v864_v58 = vmul.f32 %v863_v57, %v847_v40 }
 0x279   : > { %v868_v60 = vmul.f32 %v1737_v56, %v864_v58 }
 0x27b   : > { %v872_v61 = vadd.f32 %v1738_v59, %v868_v60  ;;  %v1184_v60 = vld [vmem:[%s2343_s23 + $0x18] sm:$0xff] }
 0x27d   : > { %1561 = vmatmul.msk.f32.vlgmr.msra.gmra.mxu0 %vm835_vm3, %v872_v61  ;;  %v1183_v61 = vld [vmem:[%s2343_s23 + $0x10] sm:$0xff] }
 0x2fa   : > { %v2402_v62 = vpop.f32.mrf.mxu0 }
 0x2fb   : > { %940 = vrot.lane.b32.xlu0 %v2402_v62, %s2031_s12  ;;  %966 = vrot.lane.b32.xlu2 %v2402_v62, %s2032_s13  ;;  %s2598_s12 = scalar_lea.vmem %s2597_s16, %s2319_s3 }
 0x2fc   : > { %901 = vrot.lane.b32.xlu1 %v2402_v62, %s2033_s15 }
 0x303   : > { %1100 = vrot.lane.b32.xlu0 %v2402_v62, %s2034_s10 }
 0x304   : > { %968 = vrot.lane.b32.xlu1 %v2402_v62, %s2035_s0 }
 0x355   : > { %v967_v2 = vpop.permute.xlu2 %966 }
 0x36d   : > { %v941_v63 = vpop.permute.xlu0 %940 }
 0x36e   : > { %v902_v0 = vpop.permute.xlu1 %901  ;;  %961 = vmatpush.msra.mxu2 %v941_v63  ;;  %v1181_v63 = vld [vmem:[%s2343_s23] sm:$0xff] }
 0x36f   : > { %1562 = vmatpush.xpose.msk.msra.mxu1 %vm903_vm8, %v902_v0 }
 0x372   : > { %1563 = vmatmul.msk.f32.vlgmr.msra.gmra.mxu1 %vm903_vm8, %v2402_v62 }
 0x375   : > { %v1101_v12 = vpop.permute.xlu0 %1100 }
 0x376   : > { %v969_v1 = vpop.permute.xlu1 %968 }
 0x377   : > { %1565 = vmatpush.xpose.msk.msra.mxu3 %vm903_vm8, %v969_v1 }
 0x37a   : > { %1566 = vmatmul.msk.f32.vlgmr.msra.gmra.mxu3 %vm903_vm8, %v967_v2 }
 0x3ef   : > { %v925_v3 = vpop.f32.mrf.mxu1 }
 0x3f0   : > { %v928_v4 = vmul.f32 0.35355338, %v925_v3 }
 0x3f2   : > { %v929_v5 = vsel %vm903_vm8, %v928_v4, -inf }
 0x3f3   : > { %930 = vmax.xlane.f32.xlu2 %v929_v5 }
 0x3fd   : > { %v991_v6 = vpop.f32.mrf.mxu3 }
 0x3fe   : > { %v994_v7 = vmul.f32 0.35355338, %v991_v6  ;;  %v1739_v6 = vld [vmem:[%s2596_s7] ss:$0 sm:$0xff] }
 0x400   : > { %v995_v8 = vsel %vm903_vm8, %v994_v7, -inf }
 0x401   : > { %996 = vmax.xlane.f32.xlu0 %v995_v8 }
 0x40b   : > { %1006 = vrot.lane.b32.xlu2 %v2402_v62, %s2036_s27 }
 0x415   : > { %1034 = vrot.lane.b32.xlu0 %v2402_v62, %s2037_s29 }
 0x466   : > { %v931_v9 = vpop.xlane.xlu2 %930 }
 0x467   : > { %v932_v10 = vsub.f32 %v928_v4, %v931_v9 }
 0x469   : > { %v933_v11 = vmul.f32 1.442695, %v932_v10 }
 0x46b   : > { %1748 = vpow2.f32 %v933_v11 }
 0x46e   : > { %v1007_v13 = vpop.permute.xlu2 %1006 }
 0x46f   : > { %1027 = vmatpush.msrb.mxu2 %v1007_v13 }
 0x471   : > { %v1749_v14 = vpop.eup %1748 }
 0x472   : > { %v935_v15 = vsel %vm903_vm8, %v1749_v14, 0.0 }
 0x473   : > { %936 = vadd.xlane.f32.xlu1 %v935_v15 }
 0x474   : > { %v997_v16 = vpop.xlane.xlu0 %996 }
 0x475   : > { %v998_v17 = vsub.f32 %v994_v7, %v997_v16  ;;  %v1248_v16 = vld [vmem:[%s2352_s8 + $0x18] sm:$0xff] }
 0x477   : > { %v999_v18 = vmul.f32 1.442695, %v998_v17  ;;  %v1247_v17 = vld [vmem:[%s2352_s8 + $0x10] sm:$0xff] }
 0x479   : > { %1750 = vpow2.f32 %v999_v18  ;;  %v1245_v18 = vld [vmem:[%s2352_s8] sm:$0xff] }
 0x47f   : > { %v1751_v19 = vpop.eup %1750 }
 0x480   : > { %v1001_v20 = vsel %vm903_vm8, %v1751_v19, 0.0 }
 0x481   : > { %1002 = vadd.xlane.f32.xlu0 %v1001_v20  ;;  %v1283_v20 = vld [vmem:[%s2362_s26 + $0x30] sm:$0xff] }
 0x487   : > { %v1035_v21 = vpop.permute.xlu0 %1034 }
 0x488   : > { %1568 = vmatpush.xpose.msk.msrb.mxu1 %vm903_vm8, %v1035_v21  ;;  %v1282_v21 = vld [vmem:[%s2362_s26 + $0x28] sm:$0xff] }
 0x48c   : > { %1098 = vrot.lane.b32.xlu1 %v2402_v62, %s2038_s30  ;;  %1204 = vmatpush.msra.mxu1 %v1184_v60 }
 0x48e   : > { %1205 = vmatpush.msra.mxu1 %v1183_v61 }
 0x495   : > { %1032 = vrot.lane.b32.xlu0 %v2402_v62, %s2039_s14 }
 0x4e6   : > { %v937_v22 = vpop.xlane.xlu1 %936 }
 0x4e7   : > { %1752 = vrcp.f32 %v937_v22 }
 0x4ed   : > { %v1753_v23 = vpop.eup %1752 }
 0x4ee   : > { %v939_v24 = vmul.f32 %v1753_v23, %v1749_v14 }
 0x4f0   : > { %1564 = vmatmul.msk.f32.vlgmr.msra.gmra.mxu2 %vm903_vm8, %v939_v24  ;;  %v1281_v24 = vld [vmem:[%s2362_s26 + $0x20] sm:$0xff] }
 0x4f1   : > { %1571 = vmatpush.xpose.msk.msra.mxu2 %vm903_vm8, %v1101_v12 }
 0x4f4   : > { %v1003_v25 = vpop.xlane.xlu0 %1002 }
 0x4f5   : > { %1754 = vrcp.f32 %v1003_v25 }
 0x4fb   : > { %v1755_v26 = vpop.eup %1754 }
 0x4fc   : > { %v1005_v27 = vmul.f32 %v1755_v26, %v1751_v19  ;;  %v1284_v19 = vld [vmem:[%s2362_s26 + $0x38] sm:$0xff] }
 0x4fd   : > { %1301 = vmatpush.msrb.mxu0 %v1284_v19  ;;  %v1280_v26 = vld [vmem:[%s2362_s26 + $0x18] sm:$0xff] }
 0x4fe   : > { %1567 = vmatmul.msk.f32.vlgmr.msrb.gmra.mxu2 %vm903_vm8, %v1005_v27  ;;  %v1099_v28 = vpop.permute.xlu1 %1098 }
 0x4ff   : > { %1302 = vmatpush.msrb.mxu0 %v1283_v20 }
 0x501   : > { %1303 = vmatpush.msrb.mxu0 %v1282_v21 }
 0x503   : > { %1304 = vmatpush.msrb.mxu0 %v1281_v24 }
 0x505   : > { %1305 = vmatpush.msrb.mxu0 %v1280_v26 }
 0x506   : > { %1572 = vmatmul.msk.f32.vlgmr.msra.gmra.mxu2 %vm903_vm8, %v1099_v28 }
 0x507   : > { %v1033_v30 = vpop.permute.xlu0 %1032 }
 0x508   : > { %1569 = vmatmul.msk.f32.vlgmr.msrb.gmra.mxu1 %vm903_vm8, %v1033_v30 }
 0x573   : > { %v2428_v31 = vpop.f32.mrf.mxu2 }
 0x581   : > { %v1029_v32 = vpop.f32.mrf.mxu2 }
 0x585   : > { %v1057_v33 = vpop.f32.mrf.mxu1 }
 0x586   : > { %v1060_v34 = vmul.f32 0.35355338, %v1057_v33 }
 0x588   : > { %v1061_v35 = vsel %vm903_vm8, %v1060_v34, -inf }
 0x589   : > { %1062 = vmax.xlane.f32.xlu2 %v1061_v35  ;;  %v1123_v36 = vpop.f32.mrf.mxu2 }
 0x58a   : > { %v1126_v38 = vmul.f32 0.35355338, %v1123_v36  ;;  %v1741_v36 = vld [vmem:[%s2310_s2] ss:$0 sm:$0xff] }
 0x58c   : > { %v1127_v39 = vsel %vm903_vm8, %v1126_v38, -inf }
 0x58d   : > { %1128 = vmax.xlane.f32.xlu0 %v1127_v39 }
 0x5a1   : > { %1072 = vrot.lane.b32.xlu0 %v2402_v62, %s2040_s18 }
 0x5fc   : > { %v1063_v40 = vpop.xlane.xlu2 %1062 }
 0x5fd   : > { %v1064_v41 = vsub.f32 %v1060_v34, %v1063_v40  ;;  %v1279_v40 = vld [vmem:[%s2362_s26 + $0x10] sm:$0xff] }
 0x5fe   : > { %1306 = vmatpush.msrb.mxu0 %v1279_v40 }
 0x5ff   : > { %v1065_v42 = vmul.f32 1.442695, %v1064_v41  ;;  %v1278_v41 = vld [vmem:[%s2362_s26 + $0x8] sm:$0xff] }
 0x600   : > { %v1129_v43 = vpop.xlane.xlu0 %1128  ;;  %1307 = vmatpush.msrb.mxu0 %v1278_v41 }
 0x601   : > { %1756 = vpow2.f32 %v1065_v42  ;;  %v1130_v44 = vsub.f32 %v1126_v38, %v1129_v43  ;;  %v1277_v42 = vld [vmem:[%s2362_s26] sm:$0xff] }
 0x602   : > { %1308 = vmatpush.msrb.mxu0 %v1277_v42  ;;  %v1742_v43 = vld [vmem:[%s749_s21] ss:$0 sm:$0xff] }
 0x603   : > { %v1131_v45 = vmul.f32 1.442695, %v1130_v44 }
 0x605   : > { %1758 = vpow2.f32 %v1131_v45 }
 0x607   : > { %v1757_v46 = vpop.eup %1756 }
 0x608   : > { %v1067_v47 = vsel %vm903_vm8, %v1757_v46, 0.0 }
 0x609   : > { %1068 = vadd.xlane.f32.xlu1 %v1067_v47  ;;  %v1743_v47 = vld [vmem:[%s757_s9] ss:$0 sm:$0xff] }
 0x60b   : > { %v1759_v48 = vpop.eup %1758 }
 0x60c   : > { %v1133_v49 = vsel %vm903_vm8, %v1759_v48, 0.0 }
 0x60d   : > { %1134 = vadd.xlane.f32.xlu2 %v1133_v49 }
 0x613   : > { %v1073_v50 = vpop.permute.xlu0 %1072 }
 0x614   : > { %1093 = vmatpush.msrb.mxu3 %v1073_v50 }
 0x616   : > { %1268 = vmatpush.msra.mxu3 %v1248_v16 }
 0x618   : > { %1269 = vmatpush.msra.mxu3 %v1247_v17 }
 0x622   : > { %1165 = vrot.lane.b32.xlu1 %v1029_v32, %s2041_s19 }
 0x625   : > { %1138 = vrot.lane.b32.xlu2 %v2402_v62, %s2042_s20  ;;  %v1182_v62 = vld [vmem:[%s2343_s23 + $0x8] sm:$0xff] }
 0x626   : > { %1206 = vmatpush.msra.mxu1 %v1182_v62 }
 0x628   : > { %1207 = vmatpush.msra.mxu1 %v1181_v63 }
 0x67c   : > { %v1069_v51 = vpop.xlane.xlu1 %1068 }
 0x67d   : > { %1760 = vrcp.f32 %v1069_v51 }
 0x680   : > { %v1135_v52 = vpop.xlane.xlu2 %1134 }
 0x681   : > { %1762 = vrcp.f32 %v1135_v52 }
 0x683   : > { %v1761_v53 = vpop.eup %1760 }
 0x684   : > { %v1071_v54 = vmul.f32 %v1761_v53, %v1757_v46 }
 0x686   : > { %1570 = vmatmul.msk.f32.vlgmr.msrb.gmra.mxu3 %vm903_vm8, %v1071_v54 }
 0x687   : > { %v1763_v55 = vpop.eup %1762 }
 0x688   : > { %v1137_v56 = vmul.f32 %v1763_v55, %v1759_v48  ;;  %v1139_v57 = vpop.permute.xlu2 %1138 }
 0x689   : > { %1159 = vmatpush.msrb.mxu2 %v1139_v57 }
 0x68a   : > { %1573 = vmatmul.msk.f32.vlgmr.msrb.gmra.mxu2 %vm903_vm8, %v1137_v56 }
 0x694   : > { %v1166_v1 = vpop.permute.xlu1 %1165 }
 0x695   : > { %v1176_v2 = vsel %vm903_vm8, %v2428_v31, %v1166_v1 }
 0x709   : > { %v1095_v58 = vpop.f32.mrf.mxu3 }
 0x70a   : > { %1169 = vrot.lane.b32.xlu0 %v1095_v58, %s2043_s25 }
 0x70d   : > { %v1161_v59 = vpop.f32.mrf.mxu2 }
 0x712   : > { %1173 = vrot.lane.b32.xlu0 %v1161_v59, %s2044_s17 }
 0x77c   : > { %v1170_v0 = vpop.permute.xlu0 %1169 }
 0x77d   : > { %v1178_v3 = vsel %vm1177_vm9, %v1176_v2, %v1170_v0 }
 0x784   : > { %v1174_v4 = vpop.permute.xlu0 %1173 }
 0x785   : > { %v1180_v5 = vsel %vm1179_vm10, %v1178_v3, %v1174_v4 }
 0x786   : > { %1574 = vmatmul.msk.f32.vlgmr.msra.gmra.mxu1 %vm835_vm3, %v1180_v5 }
 0x803   : > { %v1209_v7 = vpop.f32.mrf.mxu1 }
 0x804   : > { %v1210_v8 = vadd.f32 %v1739_v6, %v1209_v7 }
 0x806   : > { %v1212_v9 = vadd.f32 %v1210_v8, %v2377_v29  ;;  %v1246_v29 = vld [vmem:[%s2352_s8 + $0x8] sm:$0xff] }
 0x807   : > { %1270 = vmatpush.msra.mxu3 %v1246_v29 }
 0x808   : > { %v1215_v10 = vsel %vm835_vm3, %v1212_v9, 0.0 }
 0x809   : > { %1216 = vadd.xlane.f32.xlu2 %v1215_v10  ;;  %1271 = vmatpush.msra.mxu3 %v1245_v18 }
 0x87c   : > { %v1217_v11 = vpop.xlane.xlu2 %1216 }
 0x87d   : > { %v1218_v12 = vmul.f32 %v1217_v11, %v2381_v37 }
 0x87f   : > { %v1219_v13 = vsub.f32 %v1212_v9, %v1218_v12 }
 0x881   : > { %v1220_v14 = vmul.f32 %v1219_v13, %v1219_v13 }
 0x883   : > { %v1221_v15 = vsel %vm835_vm3, %v1220_v14, 0.0 }
 0x884   : > { %1222 = vadd.xlane.f32.xlu1 %v1221_v15 }
 0x8f7   : > { %v1223_v22 = vpop.xlane.xlu1 %1222 }
 0x8f8   : > { %v1224_v23 = vmul.f32 %v1223_v22, %v2381_v37  ;;  %v1740_v37 = vld [vmem:[%s2598_s12] ss:$0 sm:$0xff] }
 0x8fa   : > { %v1225_v25 = vadd.f32 1e-05, %v1224_v23 }
 0x8fc   : > { %1764 = vrsqrt.f32 %v1225_v25  ;;  %vm1232_vm12 = vweird.f32 %v1225_v25 }
 0x902   : > { %v1765_v27 = vpop.eup %1764 }
 0x903   : > { %v1227_v28 = vmul.f32 %v1765_v27, %v1225_v25  ;;  %vm1233_vm11 = vweird.f32 %v1765_v27 }
 0x904   : > { %vm1234_vm13 = vmor %vm1232_vm12, %vm1233_vm11 }
 0x905   : > { %v1228_v30 = vmul.f32 %v1765_v27, %v1227_v28 }
 0x907   : > { %v1229_v31 = vmul.f32 0.5, %v1228_v30 }
 0x909   : > { %v1230_v32 = vsub.f32 1.5, %v1229_v31 }
 0x90b   : > { %v1231_v33 = vmul.f32 %v1765_v27, %v1230_v32 }
 0x90d   : > { %v1235_v34 = vsel %vm1234_vm13, %v1765_v27, %v1231_v33 }
 0x90e   : > { %v1236_v35 = vmul.f32 %v1235_v34, %v1219_v13 }
 0x910   : > { %v1240_v38 = vmul.f32 %v1740_v37, %v1236_v35 }
 0x912   : > { %v1244_v39 = vadd.f32 %v1741_v36, %v1240_v38 }
 0x914   : > { %1575 = vmatmul.msk.f32.vlgmr.msra.gmra.mxu3 %vm835_vm3, %v1244_v39 }
 0x997   : > { %v1273_v44 = vpop.f32.mrf.mxu3 }
 0x998   : > { %v1274_v45 = vadd.f32 %v1742_v43, %v1273_v44 }
 0x99a   : > { %v1276_v46 = vmax.f32 %v1274_v45, 0.0 }
 0x99c   : > { %1576 = vmatmul.msk.f32.vlgmr.msrb.gmra.mxu0 %vm1289_vm14, %v1276_v46 }
 0xa19   : > { %v1310_v48 = vpop.f32.mrf.mxu0 }
 0xa1a   : > { %v1311_v49 = vadd.f32 %v1743_v47, %v1310_v48  ;;  %1318 = sbr.rel (%p1577_p11) target bundleno = 2592 (0xa20), region = 108 }
 0xa1c   : > { %v1313_v50 = vadd.f32 %v1311_v49, %v1212_v9 }
 0xa1e   : > { %1314 = vst.msk [vmem:[#allocation2] sm:$0xff] %vm835_vm3, %v1313_v50 }
 0xa1f   : > { %1319 = vst.msk [vmem:[%s2371_s22] sm:$0xff] %vm835_vm3, %v1313_v50 }
 0xa20 PF: > { %s30_s28 = sadd.s32 1, %s2018_s28   ;;  %s2601_s18 = sld [smem:[#allocation15_spill]] }
 0xa21   : > { %p27_p12 = scmp.ge.s32.totalorder %s30_s28, 6   ;;  %s2602_s19 = sld [smem:[#allocation16_spill]] }
 0xa22   : > { %s2603_s20 = sld [smem:[#allocation23_spill]] }
 0xa23   : > { %s2604_s21 = sld [smem:[#allocation17_spill]] }
 0xa24   : > { %s2605_s22 = sld [smem:[#allocation18_spill]] }
 0xa25   : > { %s2606_s23 = sld [smem:[#allocation24_spill]]  ;;  %29 = sbr.rel (!%p27_p12) target bundleno = 24 (0x18), region = 181 }
 0xa26   : > { %s2607_s24 = sld [smem:[#allocation19_spill]] }
 0xa27   : > { %s2608_s25 = sld [smem:[#allocation20_spill]] }
 0xa28   : > { %s2609_s26 = sld [smem:[#allocation21_spill]] }
 0xa29   : > { %s2610_s27 = sld [smem:[#allocation22_spill]] }
 0xa2a   :  { %1339 = vsyncpa [#allocation4], 1 }
 0xa2b   :  { %1341 = vsyncpa [#allocation4 + $0x1], 1 }
 0xa2c   :  { %1342 = vsyncpa [#allocation6], 1 }
 0xa2d   :  { %1343 = vsyncpa [#allocation9], 1 }

</bundles_post_ra>
